<compile_context>
chip_gen: v6e
topology: v6e:2x2x1
jax: 0.10.0
libtpu: 0.0.40
codegen_flags: <defaults>
</compile_context>

<pallas_src>
import functools

import jax
import jax.numpy as jnp
from jax.experimental import pallas as pl
from jax.experimental.pallas import tpu as pltpu


def _agent_step_kernel(x_ref, h_ref,
                       w1_ref, b1_ref,
                       wih_ref, bih_ref,
                       whh_ref, bhh_ref,
                       w2_ref, b2_ref,
                       q_ref, hnew_ref,
                       *, hid, compute_dtype):
    """One grid step == one agent.  All refs are (1, ...) per-agent VMEM blocks."""
    x = x_ref[0].astype(compute_dtype)          # (B, D_in)
    h = h_ref[0]                                # (B, H), f32

    # fc1 + ReLU (f32 accumulation)
    xh = jnp.dot(x, w1_ref[0], preferred_element_type=jnp.float32) + b1_ref[0]
    xh = jnp.maximum(xh, 0.0)

    xh_c = xh.astype(compute_dtype)
    h_c = h.astype(compute_dtype)

    # GRUCell (PyTorch semantics, gate order r|z|n), fused per path:
    # one (B,H)x(H,3H) dot per path; gates sliced at 128-lane boundaries.
    gi = jnp.dot(xh_c, wih_ref[0], preferred_element_type=jnp.float32) + bih_ref[0]
    gh = jnp.dot(h_c,  whh_ref[0], preferred_element_type=jnp.float32) + bhh_ref[0]

    i_r, i_z, i_n = gi[:, 0:hid], gi[:, hid:2 * hid], gi[:, 2 * hid:3 * hid]
    h_r, h_z, h_n = gh[:, 0:hid], gh[:, hid:2 * hid], gh[:, 2 * hid:3 * hid]

    r = jax.nn.sigmoid(i_r + h_r)
    z = jax.nn.sigmoid(i_z + h_z)
    n = jnp.tanh(i_n + r * h_n)
    h_new = (1.0 - z) * n + z * h               # (B, H), f32

    # fc2: action dim pre-padded to a multiple of 128 -> unmasked lane-dense store.
    q = jnp.dot(h_new.astype(compute_dtype), w2_ref[0],
                preferred_element_type=jnp.float32) + b2_ref[0]

    q_ref[0] = q
    hnew_ref[0] = h_new


def make_params(key, n_agents, d_in, hid, n_act):
    """Raw distinct per-agent parameters (pre-transposed so matmuls are x @ W).
    GRU weights stored per gate: index 0=r, 1=z, 2=n (PyTorch gate order)."""
    ks = jax.random.split(key, 8)
    scale = 0.1
    return {
        "fc1_w": scale * jax.random.normal(ks[0], (n_agents, d_in, hid), jnp.float32),
        "fc1_b": scale * jax.random.normal(ks[1], (n_agents, 1, hid), jnp.float32),
        "w_ih":  scale * jax.random.normal(ks[2], (n_agents, 3, hid, hid), jnp.float32),
        "b_ih":  scale * jax.random.normal(ks[3], (n_agents, 3, 1, hid), jnp.float32),
        "w_hh":  scale * jax.random.normal(ks[4], (n_agents, 3, hid, hid), jnp.float32),
        "b_hh":  scale * jax.random.normal(ks[5], (n_agents, 3, 1, hid), jnp.float32),
        "fc2_w": scale * jax.random.normal(ks[6], (n_agents, hid, n_act), jnp.float32),
        "fc2_b": scale * jax.random.normal(ks[7], (n_agents, 1, n_act), jnp.float32),
    }


def prepare_params(raw, compute_dtype=jnp.bfloat16):
    """One-time (per parameter update) preparation:
       * fuse GRU gate weights per path: (A, 3, H, H) -> (A, H, 3H), gates r|z|n
         concatenated along the lane axis (so in-kernel slices are whole-vreg),
       * pad fc2 to a lane-dense multiple of 128 action columns,
       * cast weight matrices to `compute_dtype` (bf16 halves weight DMA);
         biases stay f32 (tiny, added to f32 accumulators).
    """
    n_agents, d_in, hid = raw["fc1_w"].shape
    n_act = raw["fc2_w"].shape[-1]
    n_act_pad = max(128, ((n_act + 127) // 128) * 128)
    pad = n_act_pad - n_act

    wih = jnp.concatenate([raw["w_ih"][:, g] for g in range(3)], axis=-1)   # (A, H, 3H)
    whh = jnp.concatenate([raw["w_hh"][:, g] for g in range(3)], axis=-1)   # (A, H, 3H)
    bih = jnp.concatenate([raw["b_ih"][:, g] for g in range(3)], axis=-1)   # (A, 1, 3H)
    bhh = jnp.concatenate([raw["b_hh"][:, g] for g in range(3)], axis=-1)   # (A, 1, 3H)

    fc2_w = jnp.pad(raw["fc2_w"], ((0, 0), (0, 0), (0, pad)))
    fc2_b = jnp.pad(raw["fc2_b"], ((0, 0), (0, 0), (0, pad)))

    return {
        "fc1_w": raw["fc1_w"].astype(compute_dtype),
        "fc1_b": raw["fc1_b"],
        "w_ih":  wih.astype(compute_dtype),
        "b_ih":  bih,
        "w_hh":  whh.astype(compute_dtype),
        "b_hh":  bhh,
        "fc2_w": fc2_w.astype(compute_dtype),
        "fc2_b": fc2_b,
        "n_act": int(n_act),
        "compute_dtype": compute_dtype,
    }


def distinct_multi_agent_forward(inputs_bna, hidden_nbh, prepared):
    """inputs_bna : [batch, n_agents, input_dim]  (PyTorch layout)
       hidden_nbh : [n_agents, batch, hidden]
       prepared   : output of prepare_params (device-ready weights)
       Returns (q, h_new):
         q     : [n_agents, batch, n_actions]   (== th.stack(outputs))
         h_new : [n_agents, batch, hidden]      (updated recurrent state)
    """
    batch, n_agents, d_in = inputs_bna.shape
    hid = hidden_nbh.shape[-1]
    n_act = prepared["n_act"]
    n_act_pad = prepared["fc2_w"].shape[-1]
    compute_dtype = prepared["compute_dtype"]

    # Leading-axis agent indexing is a layout no-op in the kernel; transposing this
    # tiny (B, A, D) slab once in the wrapper is cheaper than per-agent cross-sublane
    # selects inside the kernel.
    x_abd = jnp.transpose(inputs_bna, (1, 0, 2))            # (A, B, D_in)

    operands = (x_abd, hidden_nbh,
                prepared["fc1_w"], prepared["fc1_b"],
                prepared["w_ih"], prepared["b_ih"],
                prepared["w_hh"], prepared["b_hh"],
                prepared["fc2_w"], prepared["fc2_b"])

    # Per-agent blocks: leading agent axis blocked at 1; trailing dims full-extent.
    in_specs = [pl.BlockSpec((1,) + op.shape[1:], lambda a: (a, 0, 0))
                for op in operands]
    out_specs = [pl.BlockSpec((1, batch, n_act_pad), lambda a: (a, 0, 0)),
                 pl.BlockSpec((1, batch, hid), lambda a: (a, 0, 0))]
    out_shape = (jax.ShapeDtypeStruct((n_agents, batch, n_act_pad), jnp.float32),
                 jax.ShapeDtypeStruct((n_agents, batch, hid), jnp.float32))

    def nbytes(x):
        return x.size * jnp.dtype(x.dtype).itemsize

    # VMEM budget: one agent's blocks, double-buffered, plus headroom; capped below
    # v7x's 64 MiB physical VMEM.
    per_agent_bytes = (sum(nbytes(op) for op in operands) // n_agents
                       + batch * (n_act_pad + hid) * 4)
    vmem_limit = int(min(60 * 2 ** 20, max(32 * 2 ** 20, 4 * per_agent_bytes)))

    flops = 2 * n_agents * batch * (d_in * hid + 6 * hid * hid + hid * n_act_pad)
    transcendentals = 3 * n_agents * batch * hid
    bytes_accessed = int(sum(nbytes(op) for op in operands)
                         + n_agents * batch * (n_act_pad + hid) * 4)

    q_pad, h_new = pl.pallas_call(
        functools.partial(_agent_step_kernel, hid=hid, compute_dtype=compute_dtype),
        out_shape=out_shape,
        grid_spec=pltpu.PrefetchScalarGridSpec(
            num_scalar_prefetch=0,
            grid=(n_agents,),
            in_specs=in_specs,
            out_specs=out_specs),
        compiler_params=pltpu.CompilerParams(
            dimension_semantics=("parallel",),   # splits agents across v7x's 2 TCs
            vmem_limit_bytes=vmem_limit),
        cost_estimate=pl.CostEstimate(flops=flops,
                                      transcendentals=transcendentals,
                                      bytes_accessed=bytes_accessed),
    )(*operands)

    return q_pad[:, :, :n_act], h_new


def reference_forward(inputs_bna, hidden_nbh, raw):
    """Pure-JAX reference mirroring the PyTorch per-agent loop (raw f32 params)."""
    outs, hs = [], []
    n_agents = hidden_nbh.shape[0]
    for i in range(n_agents):
        x = inputs_bna[:, i, :]
        h = hidden_nbh[i]
        xh = jnp.maximum(x @ raw["fc1_w"][i] + raw["fc1_b"][i], 0.0)
        r = jax.nn.sigmoid(xh @ raw["w_ih"][i, 0] + raw["b_ih"][i, 0]
                           + h @ raw["w_hh"][i, 0] + raw["b_hh"][i, 0])
        z = jax.nn.sigmoid(xh @ raw["w_ih"][i, 1] + raw["b_ih"][i, 1]
                           + h @ raw["w_hh"][i, 1] + raw["b_hh"][i, 1])
        n = jnp.tanh(xh @ raw["w_ih"][i, 2] + raw["b_ih"][i, 2]
                     + r * (h @ raw["w_hh"][i, 2] + raw["b_hh"][i, 2]))
        h_new = (1.0 - z) * n + z * h
        outs.append(h_new @ raw["fc2_w"][i] + raw["fc2_b"][i])
        hs.append(h_new)
    return jnp.stack(outs), jnp.stack(hs)


if __name__ == "__main__":
    # Small MARL-like shapes: hid is a multiple of 128 so GRU gate slices land on
    # lane boundaries; n_act is padded to 128 internally.
    n_agents, batch, d_in, hid, n_act = 3, 8, 32, 128, 8

    key = jax.random.PRNGKey(0)
    k_in, k_h, k_p = jax.random.split(key, 3)

    inputs = jax.random.normal(k_in, (batch, n_agents, d_in), jnp.float32)  # PyTorch layout
    hidden = jax.random.normal(k_h, (n_agents, batch, hid), jnp.float32)
    raw = make_params(k_p, n_agents, d_in, hid, n_act)

    q_ref, h_ref = reference_forward(inputs, hidden, raw)

    # 1) f32 path: exact-semantics check against the reference.
    params_f32 = prepare_params(raw, compute_dtype=jnp.float32)
    q32, h32 = distinct_multi_agent_forward(inputs, hidden, params_f32)
    q32 = jax.block_until_ready(q32)
    h32 = jax.block_until_ready(h32)
    assert q32.shape == (n_agents, batch, n_act)
    assert h32.shape == (n_agents, batch, hid)
    assert jnp.allclose(q32, q_ref, atol=1e-5, rtol=1e-5), "q mismatch vs reference (f32)"
    assert jnp.allclose(h32, h_ref, atol=1e-5, rtol=1e-5), "hidden mismatch vs reference (f32)"

    # 2) bf16-weight path (production default): halves weight DMA, bf16 MXU dots,
    #    f32 accumulation and f32 gate math -> only matmul-input rounding vs f32.
    params_bf16 = prepare_params(raw, compute_dtype=jnp.bfloat16)
    qb, hb = distinct_multi_agent_forward(inputs, hidden, params_bf16)
    qb = jax.block_until_ready(qb)
    hb = jax.block_until_ready(hb)
    assert jnp.allclose(qb, q_ref, atol=5e-2, rtol=0), "q mismatch vs reference (bf16)"
    assert jnp.allclose(hb, h_ref, atol=5e-2, rtol=0), "hidden mismatch vs reference (bf16)"

    print("KERNEL_OK")
</pallas_src>

<mosaic_0001>
module attributes {stable_mosaic.version = 11 : i64} {
  func.func @_agent_step_kernel(%arg0: i32, %arg1: memref<1x8x32xf32, #tpu.memory_space<vmem>>, %arg2: memref<1x8x128xf32, #tpu.memory_space<vmem>>, %arg3: memref<1x32x128xf32, #tpu.memory_space<vmem>>, %arg4: memref<1x1x128xf32, #tpu.memory_space<vmem>>, %arg5: memref<1x128x384xf32, #tpu.memory_space<vmem>>, %arg6: memref<1x1x384xf32, #tpu.memory_space<vmem>>, %arg7: memref<1x128x384xf32, #tpu.memory_space<vmem>>, %arg8: memref<1x1x384xf32, #tpu.memory_space<vmem>>, %arg9: memref<1x128x128xf32, #tpu.memory_space<vmem>>, %arg10: memref<1x1x128xf32, #tpu.memory_space<vmem>>, %arg11: memref<1x8x128xf32, #tpu.memory_space<vmem>>, %arg12: memref<1x8x128xf32, #tpu.memory_space<vmem>>) attributes {dimension_semantics = [#tpu.dimension_semantics<parallel>], iteration_bounds = array<i64: 3>, scalar_prefetch = 0 : i64, scratch_operands = 0 : i64, tpu.core_type = #tpu.core_type<tc>, window_params = [{transform_indices = @transform_0, window_bounds = array<i64: 1, 8, 32>}, {transform_indices = @transform_1, window_bounds = array<i64: 1, 8, 128>}, {transform_indices = @transform_2, window_bounds = array<i64: 1, 32, 128>}, {transform_indices = @transform_3, window_bounds = array<i64: 1, 1, 128>}, {transform_indices = @transform_4, window_bounds = array<i64: 1, 128, 384>}, {transform_indices = @transform_5, window_bounds = array<i64: 1, 1, 384>}, {transform_indices = @transform_6, window_bounds = array<i64: 1, 128, 384>}, {transform_indices = @transform_7, window_bounds = array<i64: 1, 1, 384>}, {transform_indices = @transform_8, window_bounds = array<i64: 1, 128, 128>}, {transform_indices = @transform_9, window_bounds = array<i64: 1, 1, 128>}, {transform_indices = @transform_10, window_bounds = array<i64: 1, 8, 128>}, {transform_indices = @transform_11, window_bounds = array<i64: 1, 8, 128>}]} {
    %c0 = arith.constant 0 : index
    %c0_0 = arith.constant 0 : index
    %c0_1 = arith.constant 0 : index
    %0 = vector.load %arg1[%c0, %c0_0, %c0_1] : memref<1x8x32xf32, #tpu.memory_space<vmem>>, vector<1x8x32xf32>
    %1 = vector.shape_cast %0 : vector<1x8x32xf32> to vector<8x32xf32>
    %c0_2 = arith.constant 0 : index
    %c0_3 = arith.constant 0 : index
    %c0_4 = arith.constant 0 : index
    %2 = vector.load %arg2[%c0_2, %c0_3, %c0_4] : memref<1x8x128xf32, #tpu.memory_space<vmem>>, vector<1x8x128xf32>
    %3 = vector.shape_cast %2 : vector<1x8x128xf32> to vector<8x128xf32>
    %c0_5 = arith.constant 0 : index
    %c0_6 = arith.constant 0 : index
    %c0_7 = arith.constant 0 : index
    %4 = vector.load %arg3[%c0_5, %c0_6, %c0_7] : memref<1x32x128xf32, #tpu.memory_space<vmem>>, vector<1x32x128xf32>
    %5 = vector.shape_cast %4 : vector<1x32x128xf32> to vector<32x128xf32>
    %cst = arith.constant dense<0.000000e+00> : vector<8x128xf32>
    %6 = tpu.matmul %1, %5, %cst {dimension_numbers = #tpu.dot_dimension_numbers<[1], [0], [0], [1], [0, 0, 1, 1], [], []>} : vector<8x32xf32>, vector<32x128xf32>, vector<8x128xf32> -> vector<8x128xf32>
    %c0_8 = arith.constant 0 : index
    %c0_9 = arith.constant 0 : index
    %c0_10 = arith.constant 0 : index
    %7 = vector.load %arg4[%c0_8, %c0_9, %c0_10] : memref<1x1x128xf32, #tpu.memory_space<vmem>>, vector<1x1x128xf32>
    %8 = vector.shape_cast %7 : vector<1x1x128xf32> to vector<1x128xf32>
    %9 = vector.broadcast %8 : vector<1x128xf32> to vector<8x128xf32>
    %10 = arith.addf %6, %9 : vector<8x128xf32>
    %cst_11 = arith.constant 0.000000e+00 : f32
    %11 = vector.broadcast %cst_11 : f32 to vector<8x128xf32>
    %12 = arith.maximumf %10, %11 : vector<8x128xf32>
    %c0_12 = arith.constant 0 : index
    %c0_13 = arith.constant 0 : index
    %c0_14 = arith.constant 0 : index
    %13 = vector.load %arg5[%c0_12, %c0_13, %c0_14] : memref<1x128x384xf32, #tpu.memory_space<vmem>>, vector<1x128x384xf32>
    %14 = vector.shape_cast %13 : vector<1x128x384xf32> to vector<128x384xf32>
    %cst_15 = arith.constant dense<0.000000e+00> : vector<8x384xf32>
    %15 = tpu.matmul %12, %14, %cst_15 {dimension_numbers = #tpu.dot_dimension_numbers<[1], [0], [0], [1], [0, 0, 1, 1], [], []>} : vector<8x128xf32>, vector<128x384xf32>, vector<8x384xf32> -> vector<8x384xf32>
    %c0_16 = arith.constant 0 : index
    %c0_17 = arith.constant 0 : index
    %c0_18 = arith.constant 0 : index
    %16 = vector.load %arg6[%c0_16, %c0_17, %c0_18] : memref<1x1x384xf32, #tpu.memory_space<vmem>>, vector<1x1x384xf32>
    %17 = vector.shape_cast %16 : vector<1x1x384xf32> to vector<1x384xf32>
    %18 = vector.broadcast %17 : vector<1x384xf32> to vector<8x384xf32>
    %19 = arith.addf %15, %18 : vector<8x384xf32>
    %c0_19 = arith.constant 0 : index
    %c0_20 = arith.constant 0 : index
    %c0_21 = arith.constant 0 : index
    %20 = vector.load %arg7[%c0_19, %c0_20, %c0_21] : memref<1x128x384xf32, #tpu.memory_space<vmem>>, vector<1x128x384xf32>
    %21 = vector.shape_cast %20 : vector<1x128x384xf32> to vector<128x384xf32>
    %cst_22 = arith.constant dense<0.000000e+00> : vector<8x384xf32>
    %22 = tpu.matmul %3, %21, %cst_22 {dimension_numbers = #tpu.dot_dimension_numbers<[1], [0], [0], [1], [0, 0, 1, 1], [], []>} : vector<8x128xf32>, vector<128x384xf32>, vector<8x384xf32> -> vector<8x384xf32>
    %c0_23 = arith.constant 0 : index
    %c0_24 = arith.constant 0 : index
    %c0_25 = arith.constant 0 : index
    %23 = vector.load %arg8[%c0_23, %c0_24, %c0_25] : memref<1x1x384xf32, #tpu.memory_space<vmem>>, vector<1x1x384xf32>
    %24 = vector.shape_cast %23 : vector<1x1x384xf32> to vector<1x384xf32>
    %25 = vector.broadcast %24 : vector<1x384xf32> to vector<8x384xf32>
    %26 = arith.addf %22, %25 : vector<8x384xf32>
    %27 = vector.extract_strided_slice %19 {offsets = [0, 0], sizes = [8, 128], strides = [1, 1]} : vector<8x384xf32> to vector<8x128xf32>
    %28 = vector.extract_strided_slice %19 {offsets = [0, 128], sizes = [8, 128], strides = [1, 1]} : vector<8x384xf32> to vector<8x128xf32>
    %29 = vector.extract_strided_slice %19 {offsets = [0, 256], sizes = [8, 128], strides = [1, 1]} : vector<8x384xf32> to vector<8x128xf32>
    %30 = vector.extract_strided_slice %26 {offsets = [0, 0], sizes = [8, 128], strides = [1, 1]} : vector<8x384xf32> to vector<8x128xf32>
    %31 = vector.extract_strided_slice %26 {offsets = [0, 128], sizes = [8, 128], strides = [1, 1]} : vector<8x384xf32> to vector<8x128xf32>
    %32 = vector.extract_strided_slice %26 {offsets = [0, 256], sizes = [8, 128], strides = [1, 1]} : vector<8x384xf32> to vector<8x128xf32>
    %33 = arith.addf %27, %30 : vector<8x128xf32>
    %34 = arith.negf %33 : vector<8x128xf32>
    %35 = math.exp %34 : vector<8x128xf32>
    %cst_26 = arith.constant 1.000000e+00 : f32
    %36 = vector.broadcast %cst_26 : f32 to vector<8x128xf32>
    %37 = arith.addf %36, %35 : vector<8x128xf32>
    %38 = arith.divf %36, %37 : vector<8x128xf32>
    %39 = arith.addf %28, %31 : vector<8x128xf32>
    %40 = arith.negf %39 : vector<8x128xf32>
    %41 = math.exp %40 : vector<8x128xf32>
    %cst_27 = arith.constant 1.000000e+00 : f32
    %42 = vector.broadcast %cst_27 : f32 to vector<8x128xf32>
    %43 = arith.addf %42, %41 : vector<8x128xf32>
    %44 = arith.divf %42, %43 : vector<8x128xf32>
    %45 = arith.mulf %38, %32 : vector<8x128xf32>
    %46 = arith.addf %29, %45 : vector<8x128xf32>
    %47 = math.tanh %46 : vector<8x128xf32>
    %cst_28 = arith.constant 1.000000e+00 : f32
    %48 = vector.broadcast %cst_28 : f32 to vector<8x128xf32>
    %49 = arith.subf %48, %44 : vector<8x128xf32>
    %50 = arith.mulf %49, %47 : vector<8x128xf32>
    %51 = arith.mulf %44, %3 : vector<8x128xf32>
    %52 = arith.addf %50, %51 : vector<8x128xf32>
    %c0_29 = arith.constant 0 : index
    %c0_30 = arith.constant 0 : index
    %c0_31 = arith.constant 0 : index
    %53 = vector.load %arg9[%c0_29, %c0_30, %c0_31] : memref<1x128x128xf32, #tpu.memory_space<vmem>>, vector<1x128x128xf32>
    %54 = vector.shape_cast %53 : vector<1x128x128xf32> to vector<128x128xf32>
    %cst_32 = arith.constant dense<0.000000e+00> : vector<8x128xf32>
    %55 = tpu.matmul %52, %54, %cst_32 {dimension_numbers = #tpu.dot_dimension_numbers<[1], [0], [0], [1], [0, 0, 1, 1], [], []>} : vector<8x128xf32>, vector<128x128xf32>, vector<8x128xf32> -> vector<8x128xf32>
    %c0_33 = arith.constant 0 : index
    %c0_34 = arith.constant 0 : index
    %c0_35 = arith.constant 0 : index
    %56 = vector.load %arg10[%c0_33, %c0_34, %c0_35] : memref<1x1x128xf32, #tpu.memory_space<vmem>>, vector<1x1x128xf32>
    %57 = vector.shape_cast %56 : vector<1x1x128xf32> to vector<1x128xf32>
    %58 = vector.broadcast %57 : vector<1x128xf32> to vector<8x128xf32>
    %59 = arith.addf %55, %58 : vector<8x128xf32>
    %c0_36 = arith.constant 0 : index
    %c0_37 = arith.constant 0 : index
    %c0_38 = arith.constant 0 : index
    %60 = vector.load %arg11[%c0_36, %c0_37, %c0_38] : memref<1x8x128xf32, #tpu.memory_space<vmem>>, vector<1x8x128xf32>
    %61 = vector.shape_cast %60 : vector<1x8x128xf32> to vector<8x128xf32>
    %62 = vector.shape_cast %59 : vector<8x128xf32> to vector<1x8x128xf32>
    tpu.vector_store %arg11[%c0_36, %c0_37, %c0_38], %62 {strides = array<i32>} : memref<1x8x128xf32, #tpu.memory_space<vmem>>, vector<1x8x128xf32>,
    %c0_39 = arith.constant 0 : index
    %c0_40 = arith.constant 0 : index
    %c0_41 = arith.constant 0 : index
    %63 = vector.load %arg12[%c0_39, %c0_40, %c0_41] : memref<1x8x128xf32, #tpu.memory_space<vmem>>, vector<1x8x128xf32>
    %64 = vector.shape_cast %63 : vector<1x8x128xf32> to vector<8x128xf32>
    %65 = vector.shape_cast %52 : vector<8x128xf32> to vector<1x8x128xf32>
    tpu.vector_store %arg12[%c0_39, %c0_40, %c0_41], %65 {strides = array<i32>} : memref<1x8x128xf32, #tpu.memory_space<vmem>>, vector<1x8x128xf32>,
    return
  }
  func.func @transform_0(%arg0: i32) -> (i32, i32, i32) {
    %c0_i32 = arith.constant 0 : i32
    %c0_i32_0 = arith.constant 0 : i32
    %c0_i32_1 = arith.constant 0 : i32
    return %arg0, %c0_i32, %c0_i32_0 : i32, i32, i32
  }
  func.func @transform_1(%arg0: i32) -> (i32, i32, i32) {
    %c0_i32 = arith.constant 0 : i32
    %c0_i32_0 = arith.constant 0 : i32
    %c0_i32_1 = arith.constant 0 : i32
    return %arg0, %c0_i32, %c0_i32_0 : i32, i32, i32
  }
  func.func @transform_2(%arg0: i32) -> (i32, i32, i32) {
    %c0_i32 = arith.constant 0 : i32
    %c0_i32_0 = arith.constant 0 : i32
    %c0_i32_1 = arith.constant 0 : i32
    return %arg0, %c0_i32, %c0_i32_0 : i32, i32, i32
  }
  func.func @transform_3(%arg0: i32) -> (i32, i32, i32) {
    %c0_i32 = arith.constant 0 : i32
    %c0_i32_0 = arith.constant 0 : i32
    %c0_i32_1 = arith.constant 0 : i32
    return %arg0, %c0_i32, %c0_i32_0 : i32, i32, i32
  }
  func.func @transform_4(%arg0: i32) -> (i32, i32, i32) {
    %c0_i32 = arith.constant 0 : i32
    %c0_i32_0 = arith.constant 0 : i32
    %c0_i32_1 = arith.constant 0 : i32
    return %arg0, %c0_i32, %c0_i32_0 : i32, i32, i32
  }
  func.func @transform_5(%arg0: i32) -> (i32, i32, i32) {
    %c0_i32 = arith.constant 0 : i32
    %c0_i32_0 = arith.constant 0 : i32
    %c0_i32_1 = arith.constant 0 : i32
    return %arg0, %c0_i32, %c0_i32_0 : i32, i32, i32
  }
  func.func @transform_6(%arg0: i32) -> (i32, i32, i32) {
    %c0_i32 = arith.constant 0 : i32
    %c0_i32_0 = arith.constant 0 : i32
    %c0_i32_1 = arith.constant 0 : i32
    return %arg0, %c0_i32, %c0_i32_0 : i32, i32, i32
  }
  func.func @transform_7(%arg0: i32) -> (i32, i32, i32) {
    %c0_i32 = arith.constant 0 : i32
    %c0_i32_0 = arith.constant 0 : i32
    %c0_i32_1 = arith.constant 0 : i32
    return %arg0, %c0_i32, %c0_i32_0 : i32, i32, i32
  }
  func.func @transform_8(%arg0: i32) -> (i32, i32, i32) {
    %c0_i32 = arith.constant 0 : i32
    %c0_i32_0 = arith.constant 0 : i32
    %c0_i32_1 = arith.constant 0 : i32
    return %arg0, %c0_i32, %c0_i32_0 : i32, i32, i32
  }
  func.func @transform_9(%arg0: i32) -> (i32, i32, i32) {
    %c0_i32 = arith.constant 0 : i32
    %c0_i32_0 = arith.constant 0 : i32
    %c0_i32_1 = arith.constant 0 : i32
    return %arg0, %c0_i32, %c0_i32_0 : i32, i32, i32
  }
  func.func @transform_10(%arg0: i32) -> (i32, i32, i32) {
    %c0_i32 = arith.constant 0 : i32
    %c0_i32_0 = arith.constant 0 : i32
    %c0_i32_1 = arith.constant 0 : i32
    return %arg0, %c0_i32, %c0_i32_0 : i32, i32, i32
  }
  func.func @transform_11(%arg0: i32) -> (i32, i32, i32) {
    %c0_i32 = arith.constant 0 : i32
    %c0_i32_0 = arith.constant 0 : i32
    %c0_i32_1 = arith.constant 0 : i32
    return %arg0, %c0_i32, %c0_i32_0 : i32, i32, i32
  }
}

</mosaic_0001>

<bundles_post_ra>
// kernel: tpu_custom_call.1
= control target key start
LH: loop header
LB: loop body
LE: loop exit
PB: predicated region body
PF: predicated region fallthrough
CT: control target
= control target key end

     0   :  { %s2996_s0 = inlined_call_operand.hbm [shape: f32[3,8,32], index: 0, kind: input, shape index: {}]   ;;  %s2997_s1 = inlined_call_operand.hbm [shape: f32[3,8,128], index: 1, kind: input, shape index: {}]   ;;  %s2998_s2 = inlined_call_operand.hbm [shape: f32[3,32,128], index: 2, kind: input, shape index: {}]   ;;  %s2999_s3 = inlined_call_operand.hbm [shape: f32[3,1,128], index: 3, kind: input, shape index: {}]   ;;  %s3000_s4 = inlined_call_operand.hbm [shape: f32[3,128,384], index: 4, kind: input, shape index: {}]   ;;  %s3001_s5 = inlined_call_operand.vmem [shape: f32[3,1,384], index: 5, kind: input, shape index: {}]   ;;  %s3002_s6 = inlined_call_operand.hbm [shape: f32[3,128,384], index: 6, kind: input, shape index: {}]   ;;  %s3003_s7 = inlined_call_operand.hbm [shape: f32[3,1,384], index: 7, kind: input, shape index: {}]   ;;  %s3004_s8 = inlined_call_operand.hbm [shape: f32[3,128,128], index: 8, kind: input, shape index: {}]   ;;  %s3005_s9 = inlined_call_operand.vmem [shape: f32[3,1,128], index: 9, kind: input, shape index: {}]   ;;  %s3006_s10 = inlined_call_operand.hbm [shape: f32[3,8,128], index: 10, kind: output, shape index: {0}]   ;;  %s3007_s11 = inlined_call_operand.hbm [shape: f32[3,8,128], index: 11, kind: output, shape index: {1}]  }
   0x1   :  { %3024 = sst [smem:[#allocation31_spill]] %s2997_s1 }
   0x2   :  { %3025 = sst [smem:[#allocation32_spill]] %s2999_s3 }
   0x3   :  { %3026 = sst [smem:[#allocation33_spill]] %s3002_s6 }
   0x4   :  { %3027 = sst [smem:[#allocation34_spill]] %s3005_s9 }
   0x5   :  { %3028 = sst [smem:[#allocation35_spill]] %s3006_s10 }
   0x6   :  { %3029 = sst [smem:[#allocation36_spill]] %s3007_s11 }
   0x7   :  { %17 = vsyncpa [#allocation3], 0 }
   0x8   :  { %19 = vsyncpa [#allocation3 + $0x1], 0 }
   0x9   :  { %20 = vsyncpa [#allocation6], 0 }
   0xa   :  { %22 = vsyncpa [#allocation6 + $0x1], 0 }
   0xb   :  { %23 = vsyncpa [#allocation9], 0 }
   0xc   :  { %25 = vsyncpa [#allocation9 + $0x1], 0 }
   0xd   :  { %26 = vsyncpa [#allocation12], 0 }
   0xe   :  { %28 = vsyncpa [#allocation12 + $0x1], 0 }
   0xf   :  { %29 = vsyncpa [#allocation15], 0 }
  0x10   :  { %31 = vsyncpa [#allocation15 + $0x1], 0 }
  0x11   :  { %32 = vsyncpa [#allocation4], 0 }
  0x12   :  { %34 = vsyncpa [#allocation4 + $0x1], 0 }
  0x13   :  { %35 = vsyncpa [#allocation18], 0 }
  0x14   :  { %37 = vsyncpa [#allocation18 + $0x1], 0  ;;  %s2356_s17 = smov 0   ;;  %s2358_s18 = smov 0  }
  0x15   :  { %s2360_s19 = smov 0   ;;  %s2362_s20 = smov 0  }
  0x16 LB: > { %3030 = sst [smem:[#allocation26_spill]] %s2266_s17  ;;  %s2377_s21 = sadd.s32 4294967295, %s2278_s20   ;;  %s2278_s20 = sphi %s2362_s20, %s3066_s20   ;;  %s2274_s19 = sphi %s2360_s19, %s3068_s19   ;;  %s2270_s18 = sphi %s2358_s18, %s3070_s18   ;;  %s2266_s17 = sphi %s2356_s17, %s3069_s17  }
  0x17   : > { %3031 = sst [smem:[#allocation27_spill]] %s2274_s19  ;;  %s1624_s22 = sadd.s32 4294967294, %s2278_s20  }
  0x18   : > { %s2381_s23 = sadd.s32 1, %s2278_s20   ;;  %s50_s24 = sadd.s32 1, %s2274_s19 }
  0x19   : > { %3032 = sst [smem:[#allocation28_spill]] %s2381_s23  ;;  %s47_s25 = ssub.s32 %s2278_s20, %s2381_s23 }
  0x1a   : > { %p57_p0 = scmp.ne.s32.totalorder %s2274_s19, %s2270_s18  ;;  %p48_p1 = scmp.eq.s32.totalorder %s47_s25, 0 }
  0x1b   : > { %p58_p2 = scmp.eq.s32.totalorder %s2278_s20, 0  ;;  %p63_p3 = scmp.ne.s32.totalorder %s2270_s18, %s2266_s17 }
  0x1c   : > { %p64_p4 = scmp.eq.s32.totalorder %s2377_s21, 0  ;;  %p321_p7 = scmp.eq.s32.totalorder %s2377_s21, 2 }
  0x1d   : > { %s2393_s26 = scalar_select %p48_p1, %s2274_s19, %s50_s24  }
  0x1e   : > { %p59_p5 = por %p58_p2, %p57_p0  ;;  %p2395_p6 = por %p64_p4, %p63_p3 }
  0x1f   : > { %3033 = sst [smem:[#allocation29_spill]] %s2393_s26  ;;  %p327_p8 = scmp.eq.s32.totalorder %s1624_s22, 2 }
  0x20   : > { %s3034_s27 = scalar_select %p2395_p6, 1, 0 }
  0x21   : > { %p1894_p9 = scmp.lt.s32.totalorder %s2278_s20, 3  ;;  %p2401_p10 = por %p321_p7, %p57_p0 }
  0x22   : > { %p2405_p11 = por %p327_p8, %p63_p3  ;;  %s2410_s30 = sand.u32 1, %s2274_s19  }
  0x23   : > { %s3035_s28 = scalar_select %p2401_p10, 1, 0 }
  0x24   : > { %s3036_s29 = scalar_select %p2405_p11, 1, 0 }
  0x25   : > { %s3012_s12 = sshll.u32 %s2278_s20, 7  ;;  %s3014_s13 = sshll.u32 %s2410_s30, 3 }
  0x26   : > { %3037 = sst [smem:[#allocation30_spill]] %s3036_s29  ;;  %p2414_p12 = pnand %p1894_p9, %p59_p5 }
  0x27   : > { %s2419_s15 = sand.u32 1, %s2278_s20   ;;  %s3039_s1 = sld [smem:[#allocation31_spill]] }
  0x28   : > { %s395_s25 = scalar_lea.vmem [#allocation5], %s3014_s13  ;;  %p2435_p0 = pneg %p2414_p12 }
  0x29   : > { %s402_s26 = sshll.u32 %s395_s25, 4  ;;  %s403_s26 = int_to_ptr.vmem [resolvable:$true] %s402_s26 }
  0x2d   : > { %s2426_s24 = scalar_lea.hbm %s3039_s1, %s3012_s12  ;;  %s1949_s12 = scalar_lea.hbm %s3039_s1, 384 }
  0x2e   : > { %s1944_s23 = scalar_lea.hbm %s2426_s24, 128  ;;  %p1950_p3 = scmp.lt.s32.totalorder %s2426_s24, %s3039_s1 }
  0x2f   : > { %p1945_p13 = scmp.ne.s32.totalorder %s2426_s24, %s1944_s23  ;;  %p1951_p4 = scmp.lt.s32.totalorder %s1949_s12, %s1944_s23 }
  0x31   : > { %p1947_p1 = pnand %p2435_p0, %p1945_p13  ;;  %p1952_p5 = por %p1951_p4, %p1950_p3 }
  0x33   : > { %p1948_p2 = pneg %p1947_p1 }
  0x35   : > { %p1953_p7 = pnand %p1952_p5, %p1948_p2 }
  0x37   : > { %1956 = shalt.err (!%p1953_p7)
}
  0x38   : > { %s1957_s25 = scalar_lea.vmem %s403_s26, 128  ;;  %s2280_s19 = smov [#allocation5]  }
  0x39   : > { %p1958_p8 = scmp.ne.s32.totalorder %s403_s26, %s1957_s25  ;;  %s1962_s10 = sshll.u32 %s2280_s19, 4  ;;  %s1963_s10 = int_to_ptr.vmem [resolvable:$false] %s1962_s10 }
  0x3a   : > { %s1964_s9 = scalar_lea.vmem %s1963_s10, 256  ;;  %p1965_p13 = scmp.lt.s32.totalorder %s403_s26, %s1963_s10 }
  0x3b   : > { %p1960_p9 = pnand %p1958_p8, %p2435_p0  ;;  %p1966_p1 = scmp.lt.s32.totalorder %s1964_s9, %s1957_s25 }
  0x3d   : > { %p1961_p11 = pneg %p1960_p9  ;;  %p1967_p10 = por %p1966_p1, %p1965_p13 }
  0x3f   : > { %p1968_p6 = pnand %p1967_p10, %p1961_p11 }
  0x41   : > { %1971 = shalt.err (!%p1968_p6)
}
  0x42   : > { %s3041_s17 = scalar_lea.sflag [#allocation6], %s2419_s15  ;;  %p1641_p2 = scmp.ge.s32.totalorder %s2278_s20, 1 }
  0x43   : > { %1868 = dma.hbm_to_vmem [thread:$0]  (!%p2414_p12), %s2426_s24, 128, %s403_s26, %s3041_s17  }
  0x44   : > { %p540_p3 = scmp.lt.s32.totalorder %s2278_s20, 4  ;;  %s1634_s10 = sshll.u32 %s2278_s20, 4 }
  0x45   : > { %s3043_s3 = sld [smem:[#allocation32_spill]]  ;;  %s433_s13 = scalar_lea.vmem [#allocation8], %s2410_s30 }
  0x46   : > { %p2457_p4 = pnand %p1641_p2, %p540_p3  ;;  %s440_s16 = sshll.u32 %s433_s13, 4  ;;  %s441_s16 = int_to_ptr.vmem [resolvable:$true] %s440_s16 }
  0x48   : > { %s3042_s9 = scalar_select %p2457_p4, 1, 0 }
  0x4b   : > { %s2465_s12 = scalar_lea.hbm %s3043_s3, %s1634_s10  ;;  %s1977_s1 = scalar_lea.hbm %s3043_s3, 48 }
  0x4c   : > { %s1972_s24 = scalar_lea.hbm %s2465_s12, 16  ;;  %p1978_p5 = scmp.lt.s32.totalorder %s2465_s12, %s3043_s3 }
  0x4d   : > { %p1973_p6 = scmp.ne.s32.totalorder %s2465_s12, %s1972_s24  ;;  %p1979_p7 = scmp.lt.s32.totalorder %s1977_s1, %s1972_s24 }
  0x4f   : > { %p1975_p10 = pnand %p1973_p6, %p2435_p0  ;;  %p1980_p8 = por %p1979_p7, %p1978_p5 }
  0x51   : > { %p1976_p11 = pneg %p1975_p10 }
  0x53   : > { %p1981_p9 = pnand %p1980_p8, %p1976_p11 }
  0x55   : > { %1984 = shalt.err (!%p1981_p9)
}
  0x56   : > { %s1985_s23 = scalar_lea.vmem %s441_s16, 16  ;;  %s2281_s13 = smov [#allocation8]  }
  0x57   : > { %p1986_p13 = scmp.ne.s32.totalorder %s441_s16, %s1985_s23  ;;  %s1990_s22 = sshll.u32 %s2281_s13, 4  ;;  %s1991_s22 = int_to_ptr.vmem [resolvable:$false] %s1990_s22 }
  0x58   : > { %s1992_s26 = scalar_lea.vmem %s1991_s22, 32  ;;  %p1993_p3 = scmp.lt.s32.totalorder %s441_s16, %s1991_s22 }
  0x59   : > { %p1988_p1 = pnand %p1986_p13, %p2435_p0  ;;  %p1994_p6 = scmp.lt.s32.totalorder %s1992_s26, %s1985_s23 }
  0x5b   : > { %p1989_p2 = pneg %p1988_p1  ;;  %p1995_p10 = por %p1994_p6, %p1993_p3 }
  0x5d   : > { %p1996_p4 = pnand %p1995_p10, %p1989_p2 }
  0x5f   : > { %1999 = shalt.err (!%p1996_p4)
}
  0x60   : > { %s3044_s1 = scalar_lea.sflag [#allocation9], %s2419_s15  ;;  %s3018_s24 = smul.u32 6144, %s2278_s20 }
  0x61   : > { %1874 = dma.hbm_to_vmem [thread:$0]  (!%p2414_p12), %s2465_s12, 16, %s441_s16, %s3044_s1  }
  0x62   : > { %s3045_s6 = sld [smem:[#allocation33_spill]]  ;;  %s3046_s26 = smul.u32 384, %s2410_s30 }
  0x63   : > { %s3020_s23 = scalar_lea.sflag [#allocation12], %s2419_s15 }
  0x64   : > { %s479_s19 = scalar_lea.vmem [#allocation11], %s3046_s26 }
  0x65   : > { %s486_s10 = sshll.u32 %s479_s19, 4  ;;  %s2498_s10 = int_to_ptr.vmem [resolvable:$true] %s486_s10 }
  0x68   : > { %s2494_s22 = scalar_lea.hbm %s3045_s6, %s3018_s24  ;;  %s2005_s1 = scalar_lea.hbm %s3045_s6, 18432 }
  0x69   : > { %s2000_s13 = scalar_lea.hbm %s2494_s22, 6144  ;;  %p2006_p7 = scmp.lt.s32.totalorder %s2494_s22, %s3045_s6 }
  0x6a   : > { %p2001_p4 = scmp.ne.s32.totalorder %s2494_s22, %s2000_s13  ;;  %p2007_p8 = scmp.lt.s32.totalorder %s2005_s1, %s2000_s13 }
  0x6c   : > { %p2003_p11 = pnand %p2001_p4, %p2435_p0  ;;  %p2008_p9 = por %p2007_p8, %p2006_p7 }
  0x6e   : > { %p2004_p5 = pneg %p2003_p11 }
  0x70   : > { %p2009_p13 = pnand %p2008_p9, %p2004_p5 }
  0x72   : > { %2012 = shalt.err (!%p2009_p13)
}
  0x73   : > { %s2013_s26 = scalar_lea.vmem %s2498_s10, 6144  ;;  %s2282_s19 = smov [#allocation11]  }
  0x74   : > { %p2014_p1 = scmp.ne.s32.totalorder %s2498_s10, %s2013_s26  ;;  %s2018_s12 = sshll.u32 %s2282_s19, 4  ;;  %s2019_s12 = int_to_ptr.vmem [resolvable:$false] %s2018_s12 }
  0x75   : > { %s2020_s16 = scalar_lea.vmem %s2019_s12, 12288  ;;  %p2021_p6 = scmp.lt.s32.totalorder %s2498_s10, %s2019_s12 }
  0x76   : > { %p2016_p2 = pnand %p2014_p1, %p2435_p0  ;;  %p2022_p10 = scmp.lt.s32.totalorder %s2020_s16, %s2013_s26 }
  0x78   : > { %p2017_p3 = pneg %p2016_p2  ;;  %p2023_p4 = por %p2022_p10, %p2021_p6 }
  0x7a   : > { %p2024_p11 = pnand %p2023_p4, %p2017_p3 }
  0x7c   : > { %2027 = shalt.err (!%p2024_p11)
}
  0x7d   : > { %s3021_s13 = smov 384   ;;  %s3022_s1 = smov 24  }
  0x7e   : > { %1880 = dma.hbm_to_vmem [thread:$0]  (!%p2414_p12), %s2494_s22, 6144, %s2498_s10, %s3020_s23, %s3021_s13, %s3021_s13, %s3022_s1  }
  0x7f   : > { %s3047_s25 = sshll.u32 %s2278_s20, 7  ;;  %s3048_s12 = sshll.u32 %s2410_s30, 3 }
  0x80   : > { %s2531_s19 = scalar_lea.hbm %s2996_s0, %s3047_s25  ;;  %s377_s16 = scalar_lea.vmem [#allocation2], %s3048_s12 }
  0x81   : > { %s384_s24 = sshll.u32 %s377_s16, 4  ;;  %s1631_s3 = sshll.u32 %s2410_s30, 5  ;;  %s385_s24 = int_to_ptr.vmem [resolvable:$true] %s384_s24 }
  0x82   : > { %s374_s6 = scalar_lea.sflag [#allocation3], %s2410_s30  ;;  %s2028_s11 = scalar_lea.hbm %s2531_s19, 128 }
  0x83   : > { %p2029_p5 = scmp.ne.s32.totalorder %s2531_s19, %s2028_s11  ;;  %s2033_s17 = scalar_lea.hbm %s2996_s0, 384 }
  0x84   : > { %p2034_p9 = scmp.lt.s32.totalorder %s2531_s19, %s2996_s0  ;;  %p2035_p13 = scmp.lt.s32.totalorder %s2033_s17, %s2028_s11 }
  0x85   : > { %p2031_p7 = pnand %p2029_p5, %p2435_p0 }
  0x86   : > { %p2036_p1 = por %p2035_p13, %p2034_p9 }
  0x87   : > { %p2032_p8 = pneg %p2031_p7 }
  0x89   : > { %p2037_p2 = pnand %p2036_p1, %p2032_p8 }
  0x8b   : > { %2040 = shalt.err (!%p2037_p2)
}
  0x8c   : > { %s2041_s12 = scalar_lea.vmem %s385_s24, 128  ;;  %s2285_s16 = smov [#allocation2]  }
  0x8d   : > { %p2042_p3 = scmp.ne.s32.totalorder %s385_s24, %s2041_s12  ;;  %s2046_s23 = sshll.u32 %s2285_s16, 4  ;;  %s2047_s23 = int_to_ptr.vmem [resolvable:$false] %s2046_s23 }
  0x8e   : > { %s2048_s13 = scalar_lea.vmem %s2047_s23, 256  ;;  %p2049_p4 = scmp.lt.s32.totalorder %s385_s24, %s2047_s23 }
  0x8f   : > { %p2044_p6 = pnand %p2042_p3, %p2435_p0  ;;  %p2050_p11 = scmp.lt.s32.totalorder %s2048_s13, %s2041_s12 }
  0x91   : > { %p2045_p10 = pneg %p2044_p6  ;;  %p2051_p5 = por %p2050_p11, %p2049_p4 }
  0x93   : > { %p2052_p7 = pnand %p2051_p5, %p2045_p10 }
  0x95   : > { %2055 = shalt.err (!%p2052_p7)
}
  0x96   : > { %1865 = dma.hbm_to_vmem [thread:$0]  (!%p2414_p12), %s2531_s19, 128, %s385_s24, %s374_s6  }
  0x97   : > { %s1659_s11 = sshll.u32 %s2278_s20, 9  ;;  %s413_s22 = scalar_lea.vmem [#allocation7], %s1631_s3 }
  0x98   : > { %s420_s10 = sshll.u32 %s413_s22, 4  ;;  %s2557_s26 = scalar_lea.hbm %s2998_s2, %s1659_s11  ;;  %s2559_s10 = int_to_ptr.vmem [resolvable:$true] %s420_s10 }
  0x99   : > { %s2056_s23 = scalar_lea.hbm %s2557_s26, 512  ;;  %s2061_s3 = scalar_lea.hbm %s2998_s2, 1536 }
  0x9a   : > { %p2057_p8 = scmp.ne.s32.totalorder %s2557_s26, %s2056_s23  ;;  %p2062_p1 = scmp.lt.s32.totalorder %s2557_s26, %s2998_s2 }
  0x9b   : > { %p2063_p2 = scmp.lt.s32.totalorder %s2061_s3, %s2056_s23 }
  0x9c   : > { %p2059_p9 = pnand %p2057_p8, %p2435_p0 }
  0x9d   : > { %p2064_p3 = por %p2063_p2, %p2062_p1 }
  0x9e   : > { %p2060_p13 = pneg %p2059_p9 }
  0xa0   : > { %p2065_p6 = pnand %p2064_p3, %p2060_p13 }
  0xa2   : > { %2068 = shalt.err (!%p2065_p6)
}
  0xa3   : > { %s2069_s12 = scalar_lea.vmem %s2559_s10, 512  ;;  %s2286_s16 = smov [#allocation7]  }
  0xa4   : > { %p2070_p10 = scmp.ne.s32.totalorder %s2559_s10, %s2069_s12  ;;  %s2074_s11 = sshll.u32 %s2286_s16, 4  ;;  %s2075_s11 = int_to_ptr.vmem [resolvable:$false] %s2074_s11 }
  0xa5   : > { %s2076_s22 = scalar_lea.vmem %s2075_s11, 1024  ;;  %p2077_p5 = scmp.lt.s32.totalorder %s2559_s10, %s2075_s11 }
  0xa6   : > { %p2072_p4 = pnand %p2070_p10, %p2435_p0  ;;  %p2078_p7 = scmp.lt.s32.totalorder %s2076_s22, %s2069_s12 }
  0xa8   : > { %p2073_p11 = pneg %p2072_p4  ;;  %p2079_p8 = por %p2078_p7, %p2077_p5 }
  0xaa   : > { %p2080_p9 = pnand %p2079_p8, %p2073_p11 }
  0xac   : > { %2083 = shalt.err (!%p2080_p9)
}
  0xad   : > { %s3023_s17 = smov 128   ;;  %s2288_s25 = smov 8  }
  0xae   : > { %s3049_s23 = scalar_lea.sflag [#allocation6], %s2419_s15  ;;  %s3050_s13 = smul.u32 6144, %s2278_s20 }
  0xaf   : > { %1871 = dma.hbm_to_vmem [thread:$0]  (!%p2414_p12), %s2557_s26, 512, %s2559_s10, %s3049_s23, %s3023_s17, %s3023_s17, %s2288_s25  }
  0xb0   : > { %s2591_s24 = scalar_lea.hbm %s3000_s4, %s3050_s13  ;;  %s3051_s19 = smul.u32 384, %s2410_s30 }
  0xb1   : > { %s1837_s11 = smul.u32 3, %s2410_s30  ;;  %s2084_s1 = scalar_lea.hbm %s2591_s24, 6144 }
  0xb2   : > { %s451_s12 = scalar_lea.vmem [#allocation10], %s3051_s19  ;;  %s1838_s22 = smul.u32 48, %s2278_s20 }
  0xb3   : > { %s458_s16 = sshll.u32 %s451_s12, 4  ;;  %p2085_p13 = scmp.ne.s32.totalorder %s2591_s24, %s2084_s1  ;;  %s2596_s16 = int_to_ptr.vmem [resolvable:$true] %s458_s16 }
  0xb4   : > { %s2089_s23 = scalar_lea.hbm %s3000_s4, 18432  ;;  %p2090_p3 = scmp.lt.s32.totalorder %s2591_s24, %s3000_s4 }
  0xb5   : > { %p2087_p1 = pnand %p2085_p13, %p2435_p0  ;;  %p2091_p6 = scmp.lt.s32.totalorder %s2089_s23, %s2084_s1 }
  0xb7   : > { %p2088_p2 = pneg %p2087_p1  ;;  %p2092_p10 = por %p2091_p6, %p2090_p3 }
  0xb9   : > { %p2093_p4 = pnand %p2092_p10, %p2088_p2 }
  0xbb   : > { %2096 = shalt.err (!%p2093_p4)
}
  0xbc   : > { %s2097_s3 = scalar_lea.vmem %s2596_s16, 6144  ;;  %s2289_s19 = smov [#allocation10]  }
  0xbd   : > { %p2098_p11 = scmp.ne.s32.totalorder %s2596_s16, %s2097_s3  ;;  %s2102_s12 = sshll.u32 %s2289_s19, 4  ;;  %s2103_s12 = int_to_ptr.vmem [resolvable:$false] %s2102_s12 }
  0xbe   : > { %s2104_s10 = scalar_lea.vmem %s2103_s12, 12288  ;;  %p2105_p8 = scmp.lt.s32.totalorder %s2596_s16, %s2103_s12 }
  0xbf   : > { %p2100_p5 = pnand %p2098_p11, %p2435_p0  ;;  %p2106_p9 = scmp.lt.s32.totalorder %s2104_s10, %s2097_s3 }
  0xc1   : > { %p2101_p7 = pneg %p2100_p5  ;;  %p2107_p13 = por %p2106_p9, %p2105_p8 }
  0xc3   : > { %p2108_p1 = pnand %p2107_p13, %p2101_p7 }
  0xc5   : > { %2111 = shalt.err (!%p2108_p1)
}
  0xc6   : > { %s3052_s1 = smov 24   ;;  %s3053_s26 = smov 384  }
  0xc7   : > { %s3054_s23 = scalar_lea.sflag [#allocation9], %s2419_s15  ;;  %s2629_s3 = scalar_lea.hbm %s3003_s7, %s1838_s22 }
  0xc8   : > { %1877 = dma.hbm_to_vmem [thread:$0]  (!%p2414_p12), %s2591_s24, 6144, %s2596_s16, %s3054_s23, %s3053_s26, %s3053_s26, %s3052_s1  }
  0xc9   : > { %s500_s19 = scalar_lea.vmem [#allocation13], %s1837_s11  ;;  %s1638_s10 = sshll.u32 %s2410_s30, 7 }
  0xca   : > { %s508_s12 = sshll.u32 %s500_s19, 4  ;;  %s2112_s17 = scalar_lea.hbm %s2629_s3, 48  ;;  %s509_s12 = int_to_ptr.vmem [resolvable:$true] %s508_s12 }
  0xcb   : > { %p2113_p2 = scmp.ne.s32.totalorder %s2629_s3, %s2112_s17  ;;  %s2117_s1 = scalar_lea.hbm %s3003_s7, 144 }
  0xcc   : > { %p2118_p10 = scmp.lt.s32.totalorder %s2629_s3, %s3003_s7  ;;  %p2119_p4 = scmp.lt.s32.totalorder %s2117_s1, %s2112_s17 }
  0xcd   : > { %p2115_p3 = pnand %p2113_p2, %p2435_p0 }
  0xce   : > { %p2120_p11 = por %p2119_p4, %p2118_p10 }
  0xcf   : > { %p2116_p6 = pneg %p2115_p3 }
  0xd1   : > { %p2121_p5 = pnand %p2120_p11, %p2116_p6 }
  0xd3   : > { %2124 = shalt.err (!%p2121_p5)
}
  0xd4   : > { %s2125_s11 = scalar_lea.vmem %s509_s12, 48  ;;  %s2290_s23 = smov [#allocation13]  }
  0xd5   : > { %p2126_p7 = scmp.ne.s32.totalorder %s509_s12, %s2125_s11  ;;  %s2130_s13 = sshll.u32 %s2290_s23, 4  ;;  %s2131_s13 = int_to_ptr.vmem [resolvable:$false] %s2130_s13 }
  0xd6   : > { %s2132_s6 = scalar_lea.vmem %s2131_s13, 96  ;;  %p2133_p13 = scmp.lt.s32.totalorder %s509_s12, %s2131_s13 }
  0xd7   : > { %p2128_p8 = pnand %p2126_p7, %p2435_p0  ;;  %p2134_p1 = scmp.lt.s32.totalorder %s2132_s6, %s2125_s11 }
  0xd9   : > { %p2129_p9 = pneg %p2128_p8  ;;  %p2135_p2 = por %p2134_p1, %p2133_p13 }
  0xdb   : > { %p2136_p3 = pnand %p2135_p2, %p2129_p9 }
  0xdd   : > { %2139 = shalt.err (!%p2136_p3)
}
  0xde   : > { %s3055_s17 = scalar_lea.sflag [#allocation12], %s2419_s15  ;;  %s1660_s19 = sshll.u32 %s2278_s20, 11 }
  0xdf   : > { %1883 = dma.hbm_to_vmem [thread:$0]  (!%p2414_p12), %s2629_s3, 48, %s509_s12, %s3055_s17  }
  0xe0   : > { %s2656_s1 = scalar_lea.hbm %s3004_s8, %s1660_s19  ;;  %s519_s26 = scalar_lea.vmem [#allocation14], %s1638_s10 }
  0xe1   : > { %s526_s22 = sshll.u32 %s519_s26, 4  ;;  %s516_s11 = scalar_lea.sflag [#allocation15], %s2410_s30  ;;  %s2658_s22 = int_to_ptr.vmem [resolvable:$true] %s526_s22 }
  0xe2   : > { %s2140_s15 = scalar_lea.hbm %s2656_s1, 2048  ;;  %s2145_s23 = scalar_lea.hbm %s3004_s8, 6144 }
  0xe3   : > { %p2141_p6 = scmp.ne.s32.totalorder %s2656_s1, %s2140_s15  ;;  %p2146_p11 = scmp.lt.s32.totalorder %s2656_s1, %s3004_s8 }
  0xe4   : > { %p2147_p5 = scmp.lt.s32.totalorder %s2145_s23, %s2140_s15 }
  0xe5   : > { %p2143_p10 = pnand %p2141_p6, %p2435_p0 }
  0xe6   : > { %p2148_p7 = por %p2147_p5, %p2146_p11 }
  0xe7   : > { %p2144_p4 = pneg %p2143_p10 }
  0xe9   : > { %p2149_p8 = pnand %p2148_p7, %p2144_p4 }
  0xeb   : > { %2152 = shalt.err (!%p2149_p8)
}
  0xec   : > { %s2153_s30 = scalar_lea.vmem %s2658_s22, 2048  ;;  %s2291_s10 = smov [#allocation14]  }
  0xed   : > { %p2154_p9 = scmp.ne.s32.totalorder %s2658_s22, %s2153_s30  ;;  %s2158_s17 = sshll.u32 %s2291_s10, 4  ;;  %s2159_s17 = int_to_ptr.vmem [resolvable:$false] %s2158_s17 }
  0xee   : > { %s2160_s19 = scalar_lea.vmem %s2159_s17, 4096  ;;  %p2161_p2 = scmp.lt.s32.totalorder %s2658_s22, %s2159_s17 }
  0xef   : > { %p2156_p13 = pnand %p2154_p9, %p2435_p0  ;;  %p2162_p3 = scmp.lt.s32.totalorder %s2160_s19, %s2153_s30 }
  0xf1   : > { %p2157_p1 = pneg %p2156_p13  ;;  %p2163_p6 = por %p2162_p3, %p2161_p2 }
  0xf3   : > { %p2164_p10 = pnand %p2163_p6, %p2157_p1 }
  0xf5   : > { %2167 = shalt.err (!%p2164_p10)
}
  0xf6   : > { %s3056_s24 = smov 128   ;;  %p3057_p0 = scmp.ne.s32.totalorder %s3042_s9, 0 }
  0xf7   : > { %1886 = dma.hbm_to_vmem [thread:$0]  (!%p2414_p12), %s2656_s1, 2048, %s2658_s22, %s516_s11, %s3056_s24, %s3056_s24, %s2288_s25  }
  0xf8   : > { %544 = sbr.rel (%p3057_p0) target bundleno = 965 (0x3c5), region = 60  ;;  %s2687_s29 = sand.u32 (!%p3057_p0), 1, %s2270_s18  }
  0xf9   : > { %s2690_s16 = sshll.u32 (!%p3057_p0), %s2687_s29, 3  ;;  %s547_s26 = scalar_lea.sflag (!%p3057_p0), [#allocation3], %s2687_s29 }
  0xfa   : > { %s550_s14 = scalar_lea.vmem (!%p3057_p0), [#allocation2], %s2690_s16  ;;  %p3058_p4 = scmp.ne.s32.totalorder (!%p3057_p0), %s3034_s27, 0 }
  0xfd   : > { %2237 = dma.done.wait (%p3058_p4), %s547_s26, 128  }
  0xfe   : > { %2239 = vsyncadd (%p3058_p4), %s547_s26, 4294967168  ;;  %s555_s9 = sand.u32 1, %s2377_s21   ;;  %s559_s1 = scalar_lea.vmem [#allocation5], %s2690_s16 }
  0xff   : > { %s556_s25 = scalar_lea.sflag [#allocation6], %s555_s9 }
 0x100   : > { %2241 = dma.done.wait (%p3058_p4), %s556_s25, 640  }
 0x101   : > { %2243 = vsyncadd (%p3058_p4), %s556_s25, 4294966656  ;;  %s1644_s22 = sshll.u32 %s2687_s29, 5  ;;  %s574_s15 = scalar_lea.sflag [#allocation9], %s555_s9 }
 0x102   : > { %s2705_s11 = scalar_lea.vmem [#allocation7], %s1644_s22  ;;  %s576_s3 = scalar_lea.vmem [#allocation8], %s2687_s29 }
 0x103   : > { %2245 = dma.done.wait (%p3058_p4), %s574_s15, 6160  }
 0x104   : > { %2247 = vsyncadd (%p3058_p4), %s574_s15, 4294961136  ;;  %s1839_s12 = smul.u32 384, %s2687_s29  ;;  %s591_s13 = scalar_lea.sflag [#allocation12], %s555_s9 }
 0x106   : > { %s2713_s23 = scalar_lea.vmem [#allocation10], %s1839_s12  ;;  %s2715_s6 = scalar_lea.vmem [#allocation11], %s1839_s12 }
 0x107   : > { %2249 = dma.done.wait (%p3058_p4), %s591_s13, 6192  }
 0x108   : > { %2251 = vsyncadd (%p3058_p4), %s591_s13, 4294961104  ;;  %s1840_s30 = smul.u32 3, %s2687_s29  ;;  %s1645_s10 = sshll.u32 %s2687_s29, 7 }
 0x109   : > { %s609_s19 = scalar_lea.sflag [#allocation15], %s2687_s29  ;;  %s2726_s24 = scalar_lea.vmem [#allocation14], %s1645_s10 }
 0x10a   : > { %s2723_s17 = scalar_lea.vmem [#allocation13], %s1840_s30 }
 0x10b   : > { %2253 = dma.done.wait (%p3058_p4), %s609_s19, 2048  }
 0x10c   : > { %2255 = vsyncadd (%p3058_p4), %s609_s19, 4294965248  ;;  %v2292_v0 = vmov 0.0   ;;  %vm2293_vm0 = vmmov 0   ;;  %v709_v1 = vld [vmem:[%s2705_s11 + $0x18] sm:$0xff]  ;;  %v708_v2 = vld [vmem:[%s2705_s11 + $0x10] sm:$0xff]  ;;  %vm717_vm1 = vcmask 261120  }
 0x10d   : > { %1717 = vmatprep.subr.mxu0 %v2292_v0  ;;  %1725 = vmatprep.mubr.msk.f32.mxu0 %vm2293_vm0, %v2292_v0  ;;  %v838_v3 = vld [vmem:[%s2713_s23 + $0x170] sm:$0xff]  ;;  %v707_v4 = vld [vmem:[%s2705_s11 + $0x8] sm:$0xff]  ;;  %v835_v6 = vld [vmem:[%s2713_s23 + $0x158] sm:$0xff]  ;;  %p697_p12 = scmp.lt.s32.totalorder %s2377_s21, 2  ;;  %s1655_s22 = sshll.u32 %s2377_s21, 7 }
 0x10e   : > { %921 = vmatprep.mubr.f32.mxu1 %v2292_v0  ;;  %1718 = vmatpush3.msra.mxu0 %v709_v1  ;;  %v837_v5 = vld [vmem:[%s2713_s23 + $0x168] sm:$0xff]  ;;  %v834_v7 = vld [vmem:[%s2713_s23 + $0x150] sm:$0xff]  ;;  %v832_v8 = vld [vmem:[%s2713_s23 + $0x140] sm:$0xff]  ;;  %s1326_s13 = scalar_lea.sflag [#allocation18], %s2687_s29  ;;  %p3060_p5 = scmp.ne.s32.totalorder %s3035_s28, 0 }
 0x10f   : > { %1719 = vmatprep.subr.mxu0 %v2292_v0  ;;  %857 = vmatprep.subr.mxu1 %v838_v3  ;;  %v706_v9 = vld [vmem:[%s2705_s11] sm:$0xff]  ;;  %v829_v13 = vld [vmem:[%s2713_s23 + $0x128] sm:$0xff]  ;;  %v826_v16 = vld [vmem:[%s2713_s23 + $0x110] sm:$0xff]  ;;  %s2922_s27 = scalar_select %p697_p12, %s2377_s21, 2 }
 0x110   : > { %1720 = vmatpush3.msra.mxu0 %v708_v2  ;;  %858 = vmatpush1.msra.mxu1 %v837_v5  ;;  %v831_v10 = vld [vmem:[%s2713_s23 + $0x138] sm:$0xff]  ;;  %v828_v14 = vld [vmem:[%s2713_s23 + $0x120] sm:$0xff]  ;;  %v825_v17 = vld [vmem:[%s2713_s23 + $0x108] sm:$0xff]  ;;  %s2294_s30 = smov [#allocation17]  }
 0x111   : > { %1721 = vmatprep.subr.mxu0 %v2292_v0  ;;  %859 = vmatprep.subr.mxu1 %v835_v6  ;;  %v704_v11 = vld [vmem:[%s550_s14] sm:$0xff]  ;;  %v822_v20 = vld [vmem:[%s2713_s23 + $0xf0] sm:$0xff]  ;;  %s1841_s26 = smul.u32 3, %s2922_s27  ;;  %s2172_s10 = sshll.u32 %s2294_s30, 4  ;;  %s2173_s10 = int_to_ptr.vmem [resolvable:$false] %s2172_s10 }
 0x112   : > { %1722 = vmatpush3.msra.mxu0 %v707_v4  ;;  %860 = vmatpush1.msra.mxu1 %v834_v7  ;;  %v839_v12 = vld [vmem:[%s2713_s23 + $0x178] sm:$0xff]  ;;  %v836_v15 = vld [vmem:[%s2713_s23 + $0x160] sm:$0xff]  ;;  %v833_v18 = vld [vmem:[%s2713_s23 + $0x148] sm:$0xff] }
 0x113   : > { %1723 = vmatprep.subr.mxu0 %v2292_v0  ;;  %861 = vmatprep.subr.mxu1 %v832_v8  ;;  %v823_v19 = vld [vmem:[%s2713_s23 + $0xf8] sm:$0xff]  ;;  %v830_v21 = vld [vmem:[%s2713_s23 + $0x130] sm:$0xff]  ;;  %v820_v22 = vld [vmem:[%s2713_s23 + $0xe0] sm:$0xff]  ;;  %s700_s25 = scalar_lea.vmem %s3001_s5, %s1841_s26 }
 0x114   : > { %1724 = vmatpush3.msra.mxu0 %v706_v9  ;;  %862 = vmatpush1.msra.mxu1 %v831_v10  ;;  %v819_v23 = vld [vmem:[%s2713_s23 + $0xd8] sm:$0xff]  ;;  %v817_v25 = vld [vmem:[%s2713_s23 + $0xc8] sm:$0xff]  ;;  %v816_v26 = vld [vmem:[%s2713_s23 + $0xc0] sm:$0xff] }
 0x115   : > { %1726 = vmatmul.mubr.msk.f32.vlgmr.msra.gmra.mxu0 %vm717_vm1, %v704_v11  ;;  %1728 = vmatprep.subr.mxu0 %v2292_v0  ;;  %v827_v24 = vld [vmem:[%s2713_s23 + $0x118] sm:$0xff]  ;;  %v824_v27 = vld [vmem:[%s2713_s23 + $0x100] sm:$0xff]  ;;  %v814_v28 = vld [vmem:[%s2713_s23 + $0xb0] sm:$0xff] }
 0x116   : > { %1729 = vmatpush3.msra.mxu0 %v839_v12  ;;  %863 = vmatprep.subr.mxu1 %v829_v13  ;;  %v813_v29 = vld [vmem:[%s2713_s23 + $0xa8] sm:$0xff]  ;;  %v811_v31 = vld [vmem:[%s2713_s23 + $0x98] sm:$0xff]  ;;  %v810_v32 = vld [vmem:[%s2713_s23 + $0x90] sm:$0xff] }
 0x117   : > { %1730 = vmatprep.subr.mxu0 %v2292_v0  ;;  %864 = vmatpush1.msra.mxu1 %v828_v14  ;;  %v821_v30 = vld [vmem:[%s2713_s23 + $0xe8] sm:$0xff]  ;;  %v818_v33 = vld [vmem:[%s2713_s23 + $0xd0] sm:$0xff]  ;;  %v808_v34 = vld [vmem:[%s2713_s23 + $0x80] sm:$0xff] }
 0x118   : > { %1731 = vmatpush3.msra.mxu0 %v836_v15  ;;  %865 = vmatprep.subr.mxu1 %v826_v16  ;;  %v807_v35 = vld [vmem:[%s2713_s23 + $0x78] sm:$0xff]  ;;  %v805_v37 = vld [vmem:[%s2713_s23 + $0x68] sm:$0xff]  ;;  %v804_v38 = vld [vmem:[%s2713_s23 + $0x60] sm:$0xff] }
 0x119   : > { %1732 = vmatprep.subr.mxu0 %v2292_v0  ;;  %866 = vmatpush1.msra.mxu1 %v825_v17  ;;  %v815_v36 = vld [vmem:[%s2713_s23 + $0xb8] sm:$0xff]  ;;  %v812_v39 = vld [vmem:[%s2713_s23 + $0xa0] sm:$0xff]  ;;  %v802_v40 = vld [vmem:[%s2713_s23 + $0x50] sm:$0xff] }
 0x11a   : > { %1733 = vmatpush3.msra.mxu0 %v833_v18  ;;  %867 = vmatprep.subr.mxu1 %v823_v19  ;;  %v801_v41 = vld [vmem:[%s2713_s23 + $0x48] sm:$0xff]  ;;  %v799_v43 = vld [vmem:[%s2713_s23 + $0x38] sm:$0xff]  ;;  %v798_v44 = vld [vmem:[%s2713_s23 + $0x30] sm:$0xff] }
 0x11b   : > { %1734 = vmatprep.subr.mxu0 %v2292_v0  ;;  %868 = vmatpush1.msra.mxu1 %v822_v20  ;;  %v809_v42 = vld [vmem:[%s2713_s23 + $0x88] sm:$0xff]  ;;  %v806_v45 = vld [vmem:[%s2713_s23 + $0x70] sm:$0xff]  ;;  %v803_v46 = vld [vmem:[%s2713_s23 + $0x58] sm:$0xff] }
 0x11c   : > { %1735 = vmatpush3.msra.mxu0 %v830_v21  ;;  %869 = vmatprep.subr.mxu1 %v820_v22  ;;  %v796_v47 = vld [vmem:[%s2713_s23 + $0x20] sm:$0xff]  ;;  %v795_v49 = vld [vmem:[%s2713_s23 + $0x18] sm:$0xff]  ;;  %v793_v50 = vld [vmem:[%s2713_s23 + $0x8] sm:$0xff] }
 0x11d   : > { %1736 = vmatprep.subr.mxu0 %v2292_v0  ;;  %870 = vmatpush1.msra.mxu1 %v819_v23  ;;  %v800_v48 = vld [vmem:[%s2713_s23 + $0x40] sm:$0xff]  ;;  %v797_v51 = vld [vmem:[%s2713_s23 + $0x28] sm:$0xff]  ;;  %v794_v53 = vld [vmem:[%s2713_s23 + $0x10] sm:$0xff] }
 0x11e   : > { %1737 = vmatpush3.msra.mxu0 %v827_v24  ;;  %871 = vmatprep.subr.mxu1 %v817_v25  ;;  %v792_v52 = vld [vmem:[%s2713_s23] sm:$0xff]  ;;  %v1044_v54 = vld [vmem:[%s2715_s6 + $0x170] sm:$0xff]  ;;  %v1648_v55 = vld [vmem:[%s576_s3] ss:$0 sm:$0xff]  ;;  %s3059_s3 = sld [smem:[#allocation36_spill]] }
 0x11f   : > { %1738 = vmatprep.subr.mxu0 %v2292_v0  ;;  %872 = vmatpush1.msra.mxu1 %v816_v26  ;;  %v1043_v60 = vld [vmem:[%s2715_s6 + $0x168] sm:$0xff]  ;;  %v1041_v61 = vld [vmem:[%s2715_s6 + $0x158] sm:$0xff]  ;;  %v1040_v63 = vld [vmem:[%s2715_s6 + $0x150] sm:$0xff] }
 0x120   : > { %1739 = vmatpush3.msra.mxu0 %v824_v27  ;;  %873 = vmatprep.subr.mxu1 %v814_v28  ;;  %v1045_v62 = vld [vmem:[%s2715_s6 + $0x178] sm:$0xff]  ;;  %v1038_v1 = vld [vmem:[%s2715_s6 + $0x140] sm:$0xff]  ;;  %v1035_v4 = vld [vmem:[%s2715_s6 + $0x128] sm:$0xff] }
 0x121   : > { %1740 = vmatprep.subr.mxu0 %v2292_v0  ;;  %874 = vmatpush1.msra.mxu1 %v813_v29  ;;  %v1042_v2 = vld [vmem:[%s2715_s6 + $0x160] sm:$0xff]  ;;  %v1037_v3 = vld [vmem:[%s2715_s6 + $0x138] sm:$0xff]  ;;  %v1039_v5 = vld [vmem:[%s2715_s6 + $0x148] sm:$0xff] }
 0x122   : > { %1741 = vmatpush3.msra.mxu0 %v821_v30  ;;  %875 = vmatprep.subr.mxu1 %v811_v31  ;;  %v1034_v6 = vld [vmem:[%s2715_s6 + $0x120] sm:$0xff]  ;;  %v1032_v7 = vld [vmem:[%s2715_s6 + $0x110] sm:$0xff]  ;;  %v1031_v9 = vld [vmem:[%s2715_s6 + $0x108] sm:$0xff] }
 0x123   : > { %1742 = vmatprep.subr.mxu0 %v2292_v0  ;;  %876 = vmatpush1.msra.mxu1 %v810_v32  ;;  %v1036_v8 = vld [vmem:[%s2715_s6 + $0x130] sm:$0xff]  ;;  %v1029_v10 = vld [vmem:[%s2715_s6 + $0xf8] sm:$0xff]  ;;  %v1026_v13 = vld [vmem:[%s2715_s6 + $0xe0] sm:$0xff] }
 0x124   : > { %1743 = vmatpush3.msra.mxu0 %v818_v33  ;;  %877 = vmatprep.subr.mxu1 %v808_v34  ;;  %v1033_v11 = vld [vmem:[%s2715_s6 + $0x118] sm:$0xff]  ;;  %v1028_v12 = vld [vmem:[%s2715_s6 + $0xf0] sm:$0xff]  ;;  %v1030_v14 = vld [vmem:[%s2715_s6 + $0x100] sm:$0xff]  ;;  %s1350_s12 = scalar_lea.hbm %s3059_s3, %s1655_s22 }
 0x125   : > { %1744 = vmatprep.subr.mxu0 %v2292_v0  ;;  %878 = vmatpush1.msra.mxu1 %v807_v35  ;;  %v1025_v15 = vld [vmem:[%s2715_s6 + $0xd8] sm:$0xff]  ;;  %v1023_v16 = vld [vmem:[%s2715_s6 + $0xc8] sm:$0xff]  ;;  %v1022_v18 = vld [vmem:[%s2715_s6 + $0xc0] sm:$0xff] }
 0x126   : > { %1745 = vmatpush3.msra.mxu0 %v815_v36  ;;  %879 = vmatprep.subr.mxu1 %v805_v37  ;;  %v1027_v17 = vld [vmem:[%s2715_s6 + $0xe8] sm:$0xff]  ;;  %v1020_v19 = vld [vmem:[%s2715_s6 + $0xb0] sm:$0xff]  ;;  %v1017_v22 = vld [vmem:[%s2715_s6 + $0x98] sm:$0xff] }
 0x127   : > { %1746 = vmatprep.subr.mxu0 %v2292_v0  ;;  %880 = vmatpush1.msra.mxu1 %v804_v38  ;;  %v1024_v20 = vld [vmem:[%s2715_s6 + $0xd0] sm:$0xff]  ;;  %v1019_v21 = vld [vmem:[%s2715_s6 + $0xa8] sm:$0xff]  ;;  %v1021_v23 = vld [vmem:[%s2715_s6 + $0xb8] sm:$0xff] }
 0x128   : > { %1747 = vmatpush3.msra.mxu0 %v812_v39  ;;  %881 = vmatprep.subr.mxu1 %v802_v40  ;;  %v1016_v24 = vld [vmem:[%s2715_s6 + $0x90] sm:$0xff]  ;;  %v1014_v25 = vld [vmem:[%s2715_s6 + $0x80] sm:$0xff]  ;;  %v1013_v27 = vld [vmem:[%s2715_s6 + $0x78] sm:$0xff] }
 0x129   : > { %1748 = vmatprep.subr.mxu0 %v2292_v0  ;;  %882 = vmatpush1.msra.mxu1 %v801_v41  ;;  %v1018_v26 = vld [vmem:[%s2715_s6 + $0xa0] sm:$0xff]  ;;  %v1011_v28 = vld [vmem:[%s2715_s6 + $0x68] sm:$0xff]  ;;  %v1008_v31 = vld [vmem:[%s2715_s6 + $0x50] sm:$0xff] }
 0x12a   : > { %1749 = vmatpush3.msra.mxu0 %v809_v42  ;;  %883 = vmatprep.subr.mxu1 %v799_v43  ;;  %v1015_v29 = vld [vmem:[%s2715_s6 + $0x88] sm:$0xff]  ;;  %v1010_v30 = vld [vmem:[%s2715_s6 + $0x60] sm:$0xff]  ;;  %v1012_v32 = vld [vmem:[%s2715_s6 + $0x70] sm:$0xff] }
 0x12b   : > { %1750 = vmatprep.subr.mxu0 %v2292_v0  ;;  %884 = vmatpush1.msra.mxu1 %v798_v44  ;;  %v1007_v33 = vld [vmem:[%s2715_s6 + $0x48] sm:$0xff]  ;;  %v1005_v34 = vld [vmem:[%s2715_s6 + $0x38] sm:$0xff]  ;;  %v1004_v36 = vld [vmem:[%s2715_s6 + $0x30] sm:$0xff] }
 0x12c   : > { %1751 = vmatpush3.msra.mxu0 %v806_v45  ;;  %1760 = vmatprep.mubr.msk.f32.mxu0 %vm2293_vm0, %v2292_v0  ;;  %v1009_v35 = vld [vmem:[%s2715_s6 + $0x58] sm:$0xff]  ;;  %v1002_v37 = vld [vmem:[%s2715_s6 + $0x20] sm:$0xff]  ;;  %v999_v40 = vld [vmem:[%s2715_s6 + $0x8] sm:$0xff] }
 0x12d   : > { %1752 = vmatprep.subr.mxu0 %v2292_v0  ;;  %885 = vmatprep.subr.mxu1 %v796_v47  ;;  %v1006_v38 = vld [vmem:[%s2715_s6 + $0x40] sm:$0xff]  ;;  %v1001_v39 = vld [vmem:[%s2715_s6 + $0x18] sm:$0xff]  ;;  %v1003_v41 = vld [vmem:[%s2715_s6 + $0x28] sm:$0xff] }
 0x12e   : > { %1753 = vmatpush3.msra.mxu0 %v803_v46  ;;  %886 = vmatpush1.msra.mxu1 %v795_v49  ;;  %v998_v42 = vld [vmem:[%s2715_s6] sm:$0xff]  ;;  %v2877_v43 = vld [vmem:[%s559_s1] sm:$0xff]  ;;  %s696_s1 = scalar_lea.vmem [#allocation17], %s2690_s16 }
 0x12f   : > { %1754 = vmatprep.subr.mxu0 %v2292_v0  ;;  %887 = vmatprep.subr.mxu1 %v793_v50  ;;  %v1000_v44 = vld [vmem:[%s2715_s6 + $0x10] sm:$0xff]  ;;  %v1240_v45 = vld [vmem:[%s2726_s24 + $0x78] sm:$0xff]  ;;  %s1352_s23 = sshll.u32 %s696_s1, 4  ;;  %s1353_s23 = int_to_ptr.vmem [resolvable:$true] %s1352_s23 }
 0x130   : > { %1755 = vmatpush3.msra.mxu0 %v800_v48  ;;  %888 = vmatpush1.msra.mxu1 %v792_v52  ;;  %v1239_v46 = vld [vmem:[%s2726_s24 + $0x70] sm:$0xff]  ;;  %v1238_v47 = vld [vmem:[%s2726_s24 + $0x68] sm:$0xff]  ;;  %v1237_v48 = vld [vmem:[%s2726_s24 + $0x60] sm:$0xff]  ;;  %s2168_s6 = scalar_lea.vmem %s1353_s23, 128  ;;  %p2175_p9 = scmp.lt.s32.totalorder %s1353_s23, %s2173_s10 }
 0x131   : > { %1756 = vmatprep.subr.mxu0 %v2292_v0  ;;  %1063 = vmatprep.subr.mxu1 %v1044_v54  ;;  %v1236_v49 = vld [vmem:[%s2726_s24 + $0x58] sm:$0xff]  ;;  %v1235_v50 = vld [vmem:[%s2726_s24 + $0x50] sm:$0xff]  ;;  %v1233_v52 = vld [vmem:[%s2726_s24 + $0x40] sm:$0xff]  ;;  %p2169_p11 = scmp.ne.s32.totalorder %s1353_s23, %s2168_s6 }
 0x132   : > { %1757 = vmatpush3.msra.mxu0 %v797_v51  ;;  %v1234_v51 = vld [vmem:[%s2726_s24 + $0x48] sm:$0xff]  ;;  %v1231_v54 = vld [vmem:[%s2726_s24 + $0x30] sm:$0xff] }
 0x133   : > { %1758 = vmatprep.subr.mxu0 %v2292_v0  ;;  %p2170_p7 = pnand %p2169_p11, %p3060_p5 }
 0x134   : > { %1759 = vmatpush3.msra.mxu0 %v794_v53  ;;  %v1232_v53 = vld [vmem:[%s2726_s24 + $0x38] sm:$0xff] }
 0x135   : > { %1763 = vmatprep.subr.mxu0 %v2292_v0  ;;  %p2171_p8 = pneg %p2170_p7 }
 0x1d5   : > { %v787_v56 = vpop.f32.mrf.mxu0 }
 0x1d6   : > { %v788_v57 = vadd.f32 %v1648_v55, %v787_v56  ;;  %v1230_v55 = vld [vmem:[%s2726_s24 + $0x28] sm:$0xff]  ;;  %v1229_v56 = vld [vmem:[%s2726_s24 + $0x20] sm:$0xff] }
 0x1d7   : > { %v1727_v58 = vpop.f32.mrf.mxu0 }
 0x1d8   : > { %v791_v59 = vmax.f32 %v788_v57, 0.0  ;;  %v1228_v57 = vld [vmem:[%s2726_s24 + $0x18] sm:$0xff]  ;;  %v1227_v58 = vld [vmem:[%s2726_s24 + $0x10] sm:$0xff] }
 0x1da   : > { %922 = vmatmul.mubr.f32.vlgmr.msra.gmra.mxu1 %v791_v59  ;;  %1761 = vmatmul.mubr.f32.vlgmr.msra.gmra.mxu0 %v791_v59  ;;  %v1226_v59 = vld [vmem:[%s2726_s24 + $0x8] sm:$0xff] }
 0x1db   : > { %1064 = vmatpush1.msra.mxu1 %v1043_v60  ;;  %1127 = vmatprep.mubr.f32.mxu1 %v2292_v0  ;;  %v1225_v60 = vld [vmem:[%s2726_s24] sm:$0xff] }
 0x1dc   : > { %1065 = vmatprep.subr.mxu1 %v1041_v61  ;;  %1764 = vmatpush3.msra.mxu0 %v1045_v62 }
 0x1dd   : > { %1066 = vmatpush1.msra.mxu1 %v1040_v63  ;;  %1765 = vmatprep.subr.mxu0 %v2292_v0  ;;  %v842_v63 = vlaneseq }
 0x1de   : > { %1067 = vmatprep.subr.mxu1 %v1038_v1  ;;  %1766 = vmatpush3.msra.mxu0 %v1042_v2 }
 0x1df   : > { %1068 = vmatpush1.msra.mxu1 %v1037_v3  ;;  %1767 = vmatprep.subr.mxu0 %v2292_v0  ;;  %v843_v1 = vshrl.u32 %v842_v63, 7  ;;  %v840_v3 = vld [vmem:[%s700_s25] sm:$0x7] }
 0x1e0   : > { %1069 = vmatprep.subr.mxu1 %v1035_v4  ;;  %1768 = vmatpush3.msra.mxu0 %v1039_v5  ;;  %v1046_v5 = vld [vmem:[%s2723_s17] sm:$0x7]  ;;  %s2174_s17 = scalar_lea.vmem %s2173_s10, 256 }
 0x1e1   : > { %1070 = vmatpush1.msra.mxu1 %v1034_v6  ;;  %1769 = vmatprep.subr.mxu0 %v2292_v0  ;;  %v844_v2 = vsub.s32 0, %v843_v1  ;;  %p2176_p13 = scmp.lt.s32.totalorder %s2174_s17, %s2168_s6 }
 0x1e2   : > { %1071 = vmatprep.subr.mxu1 %v1032_v7  ;;  %1770 = vmatpush3.msra.mxu0 %v1036_v8  ;;  %v848_v8 = vsub.s32 1, %v843_v1 }
 0x1e3   : > { %1072 = vmatpush1.msra.mxu1 %v1031_v9  ;;  %1771 = vmatprep.subr.mxu0 %v2292_v0  ;;  %v845_v6 = vrot.slane %v840_v3, %v844_v2  ;;  %p2177_p1 = por %p2176_p13, %p2175_p9 }
 0x1e4   : > { %1073 = vmatprep.subr.mxu1 %v1029_v10  ;;  %1772 = vmatpush3.msra.mxu0 %v1033_v11 }
 0x1e5   : > { %1074 = vmatpush1.msra.mxu1 %v1028_v12  ;;  %1773 = vmatprep.subr.mxu0 %v2292_v0  ;;  %v1055_v12 = vrot.slane %v1046_v5, %v848_v8  ;;  %p2178_p2 = pnand %p2177_p1, %p2171_p8 }
 0x1e6   : > { %1075 = vmatprep.subr.mxu1 %v1026_v13  ;;  %1774 = vmatpush3.msra.mxu0 %v1030_v14 }
 0x1e7   : > { %1076 = vmatpush1.msra.mxu1 %v1025_v15  ;;  %1775 = vmatprep.subr.mxu0 %v2292_v0  ;;  %v849_v15 = vrot.slane %v840_v3, %v848_v8 }
 0x1e8   : > { %1077 = vmatprep.subr.mxu1 %v1023_v16  ;;  %1776 = vmatpush3.msra.mxu0 %v1027_v17 }
 0x1e9   : > { %1078 = vmatpush1.msra.mxu1 %v1022_v18  ;;  %1777 = vmatprep.subr.mxu0 %v2292_v0 }
 0x1ea   : > { %1079 = vmatprep.subr.mxu1 %v1020_v19  ;;  %1778 = vmatpush3.msra.mxu0 %v1024_v20 }
 0x1eb   : > { %1080 = vmatpush1.msra.mxu1 %v1019_v21  ;;  %1779 = vmatprep.subr.mxu0 %v2292_v0 }
 0x1ec   : > { %1081 = vmatprep.subr.mxu1 %v1017_v22  ;;  %1780 = vmatpush3.msra.mxu0 %v1021_v23 }
 0x1ed   : > { %1082 = vmatpush1.msra.mxu1 %v1016_v24  ;;  %1781 = vmatprep.subr.mxu0 %v2292_v0 }
 0x1ee   : > { %1083 = vmatprep.subr.mxu1 %v1014_v25  ;;  %1782 = vmatpush3.msra.mxu0 %v1018_v26  ;;  %v852_v25 = vsub.s32 2, %v843_v1 }
 0x1ef   : > { %1084 = vmatpush1.msra.mxu1 %v1013_v27  ;;  %1783 = vmatprep.subr.mxu0 %v2292_v0 }
 0x1f0   : > { %1085 = vmatprep.subr.mxu1 %v1011_v28  ;;  %1784 = vmatpush3.msra.mxu0 %v1015_v29  ;;  %v1059_v26 = vrot.slane %v1046_v5, %v852_v25  ;;  %v853_v28 = vrot.slane %v840_v3, %v852_v25 }
 0x1f1   : > { %1086 = vmatpush1.msra.mxu1 %v1010_v30  ;;  %1785 = vmatprep.subr.mxu0 %v2292_v0 }
 0x1f2   : > { %1087 = vmatprep.subr.mxu1 %v1008_v31  ;;  %1786 = vmatpush3.msra.mxu0 %v1012_v32 }
 0x1f3   : > { %1088 = vmatpush1.msra.mxu1 %v1007_v33  ;;  %1787 = vmatprep.subr.mxu0 %v2292_v0 }
 0x1f4   : > { %1089 = vmatprep.subr.mxu1 %v1005_v34  ;;  %1788 = vmatpush3.msra.mxu0 %v1009_v35 }
 0x1f5   : > { %1090 = vmatpush1.msra.mxu1 %v1004_v36  ;;  %1789 = vmatprep.subr.mxu0 %v2292_v0 }
 0x1f6   : > { %1091 = vmatprep.subr.mxu1 %v1002_v37  ;;  %1790 = vmatpush3.msra.mxu0 %v1006_v38 }
 0x1f7   : > { %1092 = vmatpush1.msra.mxu1 %v1001_v39  ;;  %1791 = vmatprep.subr.mxu0 %v2292_v0 }
 0x1f8   : > { %1093 = vmatprep.subr.mxu1 %v999_v40  ;;  %1792 = vmatpush3.msra.mxu0 %v1003_v41 }
 0x1f9   : > { %1094 = vmatpush1.msra.mxu1 %v998_v42  ;;  %1793 = vmatprep.subr.mxu0 %v2292_v0 }
 0x1fa   : > { %1128 = vmatmul.mubr.f32.vlgmr.msra.gmra.mxu1 %v2877_v43  ;;  %1794 = vmatpush3.msra.mxu0 %v1000_v44 }
 0x1fb   : > { %1795 = vmatprep.mubr.msk.f32.mxu0 %vm2293_vm0, %v2292_v0  ;;  %1798 = vmatprep.subr.mxu1 %v2292_v0 }
 0x1fc   : > { %1796 = vmatmul.mubr.f32.vlgmr.msra.gmra.mxu0 %v2877_v43  ;;  %1830 = vmatprep.mubr.msk.f32.mxu1 %vm2293_vm0, %v2292_v0 }
 0x1fd   : > { %1799 = vmatpush3.msra.mxu1 %v1240_v45 }
 0x1fe   : > { %1800 = vmatprep.subr.mxu1 %v2292_v0 }
 0x1ff   : > { %1801 = vmatpush3.msra.mxu1 %v1239_v46 }
 0x200   : > { %1802 = vmatprep.subr.mxu1 %v2292_v0 }
 0x201   : > { %1803 = vmatpush3.msra.mxu1 %v1238_v47 }
 0x202   : > { %1804 = vmatprep.subr.mxu1 %v2292_v0 }
 0x203   : > { %1805 = vmatpush3.msra.mxu1 %v1237_v48 }
 0x204   : > { %1806 = vmatprep.subr.mxu1 %v2292_v0 }
 0x205   : > { %1807 = vmatpush3.msra.mxu1 %v1236_v49 }
 0x206   : > { %1808 = vmatprep.subr.mxu1 %v2292_v0 }
 0x207   : > { %1809 = vmatpush3.msra.mxu1 %v1235_v50 }
 0x208   : > { %1810 = vmatprep.subr.mxu1 %v2292_v0 }
 0x209   : > { %1811 = vmatpush3.msra.mxu1 %v1234_v51 }
 0x20a   : > { %1812 = vmatprep.subr.mxu1 %v2292_v0 }
 0x20b   : > { %1813 = vmatpush3.msra.mxu1 %v1233_v52 }
 0x20c   : > { %1814 = vmatprep.subr.mxu1 %v2292_v0 }
 0x20d   : > { %1815 = vmatpush3.msra.mxu1 %v1232_v53 }
 0x20e   : > { %1816 = vmatprep.subr.mxu1 %v2292_v0 }
 0x20f   : > { %1817 = vmatpush3.msra.mxu1 %v1231_v54 }
 0x210   : > { %1818 = vmatprep.subr.mxu1 %v2292_v0 }
 0x211   : > { %1819 = vmatpush3.msra.mxu1 %v1230_v55 }
 0x212   : > { %1820 = vmatprep.subr.mxu1 %v2292_v0 }
 0x213   : > { %1821 = vmatpush3.msra.mxu1 %v1229_v56 }
 0x214   : > { %1822 = vmatprep.subr.mxu1 %v2292_v0 }
 0x215   : > { %1823 = vmatpush3.msra.mxu1 %v1228_v57 }
 0x216   : > { %1824 = vmatprep.subr.mxu1 %v2292_v0 }
 0x217   : > { %1825 = vmatpush3.msra.mxu1 %v1227_v58 }
 0x218   : > { %1826 = vmatprep.subr.mxu1 %v2292_v0 }
 0x219   : > { %1827 = vmatpush3.msra.mxu1 %v1226_v59 }
 0x21a   : > { %1828 = vmatprep.subr.mxu1 %v2292_v0  ;;  %v1051_v0 = vrot.slane %v1046_v5, %v844_v2 }
 0x21b   : > { %1829 = vmatpush3.msra.mxu1 %v1225_v60 }
 0x29a   : > { %v994_v61 = vpop.f32.mrf.mxu0  ;;  %v923_v4 = vpop.f32.mrf.mxu1 }
 0x29b   : > { %v924_v10 = vadd.f32 %v923_v4, %v845_v6  ;;  %v995_v32 = vadd.f32 %v994_v61, %v853_v28 }
 0x29c   : > { %v1762_v62 = vpop.f32.mrf.mxu0  ;;  %v925_v7 = vpop.f32.mrf.mxu1 }
 0x29d   : > { %v926_v20 = vadd.f32 %v925_v7, %v849_v15 }
 0x2ba   : > { %v1129_v9 = vpop.f32.mrf.mxu1 }
 0x2bb   : > { %v1130_v11 = vadd.f32 %v1129_v9, %v1051_v0 }
 0x2bc   : > { %v1131_v13 = vpop.f32.mrf.mxu1  ;;  %v1200_v14 = vpop.f32.mrf.mxu0 }
 0x2bd   : > { %v1204_v16 = vadd.f32 %v1130_v11, %v924_v10  ;;  %v1132_v19 = vadd.f32 %v1131_v13, %v1055_v12  ;;  %v1201_v30 = vadd.f32 %v1200_v14, %v1059_v26 }
 0x2be   : > { %v1797_v17 = vpop.f32.mrf.mxu0 }
 0x2bf   : > { %v1650_v18 = vmul.f32 -1.442695, %v1204_v16  ;;  %v1211_v21 = vadd.f32 %v1132_v19, %v926_v20 }
 0x2c1   : > { %1934 = vpow2.f32 %v1650_v18  ;;  %v1651_v22 = vmul.f32 -1.442695, %v1211_v21 }
 0x2c3   : > { %1936 = vpow2.f32 %v1651_v22 }
 0x2ce   : > { %v1935_v23 = vpop.eup %1934 }
 0x2cf   : > { %v1208_v24 = vadd.f32 1.0, %v1935_v23 }
 0x2d0   : > { %v1937_v27 = vpop.eup %1936 }
 0x2d1   : > { %1938 = vrcp.f32 %v1208_v24  ;;  %v1215_v29 = vadd.f32 1.0, %v1937_v27 }
 0x2d3   : > { %1940 = vrcp.f32 %v1215_v29 }
 0x2de   : > { %v1939_v31 = vpop.eup %1938 }
 0x2df   : > { %v1218_v33 = vmul.f32 %v1939_v31, %v1201_v30 }
 0x2e0   : > { %v1941_v35 = vpop.eup %1940 }
 0x2e1   : > { %v1219_v34 = vadd.f32 %v1218_v33, %v995_v32  ;;  %v1221_v36 = vsub.f32 1.0, %v1941_v35  ;;  %v1223_v39 = vmul.f32 %v1941_v35, %v2877_v43 }
 0x2e3   : > { %1942 = vtanh.f32 %v1219_v34 }
 0x2f0   : > { %v1943_v37 = vpop.eup %1942 }
 0x2f1   : > { %v1222_v38 = vmul.f32 %v1943_v37, %v1221_v36 }
 0x2f3   : > { %v1224_v40 = vadd.f32 %v1223_v39, %v1222_v38 }
 0x2f5   : > { %1831 = vmatmul.mubr.f32.vlgmr.msra.gmra.mxu1 %v1224_v40  ;;  %1319 = vst [vmem:[%s696_s1] sm:$0xff] %v1224_v40 }
 0x2f6   : > { %2181 = shalt.err (!%p2178_p2)
}
 0x2f7   : > { %s2182_s19 = scalar_lea.hbm %s1350_s12, 128  ;;  %s2186_s14 = scalar_lea.hbm %s3059_s3, 384 }
 0x2f8   : > { %p2183_p3 = scmp.ne.s32.totalorder %s1350_s12, %s2182_s19  ;;  %p2187_p0 = scmp.lt.s32.totalorder %s1350_s12, %s3059_s3 }
 0x2f9   : > { %p2188_p4 = scmp.lt.s32.totalorder %s2186_s14, %s2182_s19 }
 0x2fa   : > { %p2184_p6 = pnand %p2183_p3, %p3060_p5 }
 0x2fb   : > { %p2189_p12 = por %p2188_p4, %p2187_p0 }
 0x2fc   : > { %p2185_p10 = pneg %p2184_p6 }
 0x2fe   : > { %p2190_p11 = pnand %p2189_p12, %p2185_p10 }
 0x300   : > { %2193 = shalt.err (!%p2190_p11)
}
 0x301   : > { %1859 = dma.vmem_to_hbm [thread:$0]  (%p3060_p5), %s1353_s23, 128, %s1350_s12, %s1326_s13  }
 0x302   : > { %s3061_s15 = sld [smem:[#allocation34_spill]]  ;;  %s689_s30 = scalar_lea.vmem [#allocation16], %s2690_s16 }
 0x303   : > { %s1339_s10 = sshll.u32 %s689_s30, 4  ;;  %s3062_s24 = sld [smem:[#allocation35_spill]]  ;;  %s1340_s10 = int_to_ptr.vmem [resolvable:$true] %s1339_s10 }
 0x304   : > { %s1321_s14 = scalar_lea.sflag [#allocation4], %s2687_s29  ;;  %s2194_s12 = scalar_lea.vmem %s1340_s10, 128 }
 0x305   : > { %p2195_p7 = scmp.ne.s32.totalorder %s1340_s10, %s2194_s12 }
 0x307   : > { %p2196_p8 = pnand %p2195_p7, %p3060_p5 }
 0x308   : > { %s703_s6 = scalar_lea.vmem %s3061_s15, %s2922_s27  ;;  %s2295_s27 = smov [#allocation16]  }
 0x309   : > { %v1652_v41 = vld [vmem:[%s703_s6] ss:$0 sm:$0xff]  ;;  %s2960_s26 = scalar_lea.hbm %s3062_s24, %s1655_s22  ;;  %p2197_p9 = pneg %p2196_p8 }
 0x30a   : > { %s2198_s16 = sshll.u32 %s2295_s27, 4  ;;  %s2199_s16 = int_to_ptr.vmem [resolvable:$false] %s2198_s16 }
 0x30b   : > { %s2200_s23 = scalar_lea.vmem %s2199_s16, 256  ;;  %p2201_p13 = scmp.lt.s32.totalorder %s1340_s10, %s2199_s16 }
 0x30c   : > { %p2202_p1 = scmp.lt.s32.totalorder %s2200_s23, %s2194_s12 }
 0x30e   : > { %p2203_p2 = por %p2202_p1, %p2201_p13 }
 0x310   : > { %p2204_p3 = pnand %p2203_p2, %p2197_p9 }
 0x3b5   : > { %v1314_v42 = vpop.f32.mrf.mxu1 }
 0x3b6   : > { %v1315_v43 = vadd.f32 %v1652_v41, %v1314_v42 }
 0x3b7   : > { %v1832_v44 = vpop.f32.mrf.mxu1 }
 0x3b8   : > { %1318 = vst [vmem:[%s689_s30] sm:$0xff] %v1315_v43 }
 0x3b9   : > { %2207 = shalt.err (!%p2204_p3)
}
 0x3ba   : > { %s2208_s21 = scalar_lea.hbm %s2960_s26, 128  ;;  %s2212_s13 = scalar_lea.hbm %s3062_s24, 384 }
 0x3bb   : > { %p2209_p6 = scmp.ne.s32.totalorder %s2960_s26, %s2208_s21  ;;  %p2213_p4 = scmp.lt.s32.totalorder %s2960_s26, %s3062_s24 }
 0x3bc   : > { %p2214_p12 = scmp.lt.s32.totalorder %s2212_s13, %s2208_s21 }
 0x3bd   : > { %p2210_p10 = pnand %p2209_p6, %p3060_p5 }
 0x3be   : > { %p2215_p11 = por %p2214_p12, %p2213_p4 }
 0x3bf   : > { %p2211_p0 = pneg %p2210_p10 }
 0x3c1   : > { %p2216_p7 = pnand %p2215_p11, %p2211_p0 }
 0x3c3   : > { %2219 = shalt.err (!%p2216_p7)
}
 0x3c4   : > { %1858 = dma.vmem_to_hbm [thread:$0]  (%p3060_p5), %s1340_s10, 128, %s2960_s26, %s1321_s14  }
 0x3c5 PF: > { %s3063_s1 = sld [smem:[#allocation26_spill]]  ;;  %p1895_p8 = scmp.ge.s32.totalorder %s2278_s20, 2 }
 0x3c6   : > { %s3064_s11 = sld [smem:[#allocation30_spill]] }
 0x3cb   : > { %s1364_s15 = sand.u32 1, %s3063_s1  }
 0x3cc   : > { %p3065_p9 = scmp.ne.s32.totalorder %s3064_s11, 0  ;;  %s1365_s6 = scalar_lea.sflag [#allocation4], %s1364_s15 }
 0x3ce   : > { %p1888_p13 = pnand %p1895_p8, %p3065_p9 }
 0x3d0   : > { %p1889_p1 = pneg %p1888_p13 }
 0x3d2   : > { %2257 = dma.done.wait (%p1889_p1), %s1365_s6, 128  }
 0x3d3   : > { %2259 = vsyncadd (%p1889_p1), %s1365_s6, 4294967168  ;;  %s1374_s30 = scalar_lea.sflag [#allocation18], %s1364_s15 }
 0x3d4   : > { %2261 = dma.done.wait (%p1889_p1), %s1374_s30, 128  }
 0x3d5   : > { %2263 = vsyncadd (%p1889_p1), %s1374_s30, 4294967168  ;;  %s3066_s20 = sld [smem:[#allocation28_spill]]  ;;  %s3069_s17 = smov %s2270_s18 }
 0x3d6   : > { %s3067_s28 = sld [smem:[#allocation27_spill]] }
 0x3d7   : > { %s3068_s19 = sld [smem:[#allocation29_spill]] }
 0x3db   : > { %p40_p5 = scmp.ge.s32.totalorder %s3066_s20, 5  }
 0x3dc   : > { %s3070_s18 = smov %s3067_s28 }
 0x3dd   :  { %42 = sbr.rel (!%p40_p5) target bundleno = 22 (0x16), region = 213 }
 0x3e2   :  { %1379 = vsyncpa [#allocation3], 1 }
 0x3e3   :  { %1381 = vsyncpa [#allocation3 + $0x1], 1 }
 0x3e4   :  { %1382 = vsyncpa [#allocation6], 1 }
 0x3e5   :  { %1384 = vsyncpa [#allocation6 + $0x1], 1 }
 0x3e6   :  { %1385 = vsyncpa [#allocation9], 1 }
 0x3e7   :  { %1387 = vsyncpa [#allocation9 + $0x1], 1 }
 0x3e8   :  { %1388 = vsyncpa [#allocation12], 1 }
 0x3e9   :  { %1390 = vsyncpa [#allocation12 + $0x1], 1 }
 0x3ea   :  { %1391 = vsyncpa [#allocation15], 1 }
 0x3eb   :  { %1393 = vsyncpa [#allocation15 + $0x1], 1 }
 0x3ec   :  { %1394 = vsyncpa [#allocation4], 1 }
 0x3ed   :  { %1396 = vsyncpa [#allocation4 + $0x1], 1 }
 0x3ee   :  { %1397 = vsyncpa [#allocation18], 1 }
 0x3ef   :  { %1399 = vsyncpa [#allocation18 + $0x1], 1 }

</bundles_post_ra>
